<compile_context>
chip_gen: v5e
topology: v5e:2x2
jax: 0.10.0
libtpu: 0.0.40
codegen_flags: <defaults>
</compile_context>

<pallas_src>
import numpy as np
import jax
import jax.numpy as jnp
from jax.experimental import pallas as pl
from jax.experimental.pallas import tpu as pltpu


def san_mha_kernel(counts_ref, q_ref, k_ref, vaug_ref, e_ref,
                   summat_ref, expaug_ref, we_ref, be_ref,
                   out_ref, acc_ref):
    i = pl.program_id(0)                    # dst block (parallel)
    j = pl.program_id(1)                    # src block (reduction)
    bs, bd, in_dim_p1 = e_ref.shape
    in_dim = in_dim_p1 - 1
    hd = q_ref.shape[1]
    nh = summat_ref.shape[1]

    @pl.when(j == 0)
    def _init():
        acc_ref[...] = jnp.zeros_like(acc_ref)

    # Skip blocks with no edges (per-block counts prefetched into SMEM).
    @pl.when(counts_ref[i, j] > 0)
    def _compute():
        e_blk = e_ref[...]                                    # (bs, bd, in_dim+1) bf16
        e_x = e_blk[:, :, :in_dim]                            # edge features
        m3 = e_blk[:, :, in_dim:].astype(jnp.float32)         # (bs, bd, 1) edge mask

        # Hoisted edge projection: ONE MXU matmul per block (bf16 x bf16 -> f32 acc).
        eproj = jnp.dot(e_x.reshape(bs * bd, in_dim), we_ref[...],
                        preferred_element_type=jnp.float32) + be_ref[...]   # (bs*bd, HD)

        # score = K_src * Q_dst * E   (1/sqrt(out_dim) already folded into K host-side).
        s3 = (eproj.reshape(bs, bd, hd)
              * k_ref[...][:, None, :]                         # K broadcast over dst rows
              * q_ref[...][None, :, :])                        # Q broadcast over src rows

        # Per-head channel sum via a single block-level MXU matmul.
        score = jnp.dot(s3.reshape(bs * bd, hd), summat_ref[...],
                        preferred_element_type=jnp.float32)    # (bs*bd, H)
        p = jnp.exp(jnp.clip(score, -5.0, 5.0))                # (bs*bd, H)

        # Head -> lane expansion; the identity block in expmat_aug appends per-head
        # "ones" columns so z rides along with wV in the same accumulator.
        pexp = jnp.dot(p, expaug_ref[...],
                       preferred_element_type=jnp.float32)     # (bs*bd, HD + H)

        # Mask AFTER exp (missing edges contribute exactly 0), weight by V_aug and
        # reduce over the src (leading) axis into the resident accumulator.
        contrib = (pexp.reshape(bs, bd, hd + nh)
                   * m3
                   * vaug_ref[...][:, None, :])                # (bs, bd, HD + H)
        acc_ref[...] += jnp.sum(contrib, axis=0)               # (bd, HD + H)

    @pl.when(j == pl.num_programs(1) - 1)
    def _finalize():
        wv = acc_ref[:, :hd]                                   # (bd, HD)
        z = acc_ref[:, hd:]                                    # (bd, H)
        inv_z = pl.reciprocal(z + jnp.float32(1e-6), approx=True)
        inv_z_hd = jnp.dot(inv_z, expaug_ref[:, :hd],
                           preferred_element_type=jnp.float32)  # (bd, HD)
        out_ref[...] = (wv * inv_z_hd).astype(out_ref.dtype)


def _pick_block(n, cap):
    """Largest block <= cap tiling n; prefer multiples of 16 (bf16 sublane tile)."""
    if n <= cap:
        return n
    for step in (16, 8):
        for b in range(min(cap, n), step - 1, -1):
            if n % b == 0 and b % step == 0:
                return b
    return n


def san_mha_forward(h, e_feat, src, dst, params, out_dim, num_heads,
                    edge_dtype=jnp.bfloat16):
    n, in_dim = h.shape
    hd = out_dim * num_heads
    scale = 1.0 / float(np.sqrt(out_dim))

    # ---------------- host-side prep (plain XLA glue) ----------------
    n_pad = int(-(-n // 16) * 16)
    h_pad = jnp.zeros((n_pad, in_dim), jnp.float32).at[:n].set(h.astype(jnp.float32))

    # Node projections precomputed outside the kernel; scale folded into K.
    q = jnp.dot(h_pad, params["Wq"]) + params["bq"]
    k = (jnp.dot(h_pad, params["Wk"]) + params["bk"]) * scale
    v = jnp.dot(h_pad, params["Wv"]) + params["bv"]
    v_aug = jnp.concatenate([v, jnp.ones((n_pad, num_heads), jnp.float32)], axis=1)

    # Dense (src, dst, in_dim + 1) edge slab; the extra channel is the edge-existence
    # mask, riding inside the slab's lane padding (no extra VMEM/DMA).
    e_rows = jnp.concatenate(
        [e_feat.astype(jnp.float32), jnp.ones((e_feat.shape[0], 1), jnp.float32)], axis=1)
    e_slab = jnp.zeros((n_pad, n_pad, in_dim + 1), jnp.float32)
    e_slab = e_slab.at[src, dst].set(e_rows).astype(edge_dtype)

    # Block sizes: dst axis capped so grid[0] >= 2 when possible (v7x megacore);
    # src axis capped at 64 to bound the spilled 3-D intermediates in VMEM.
    bd_cap = 128
    if n_pad >= 32:
        bd_cap = min(bd_cap, max(16, (n_pad // 2) // 8 * 8))
    bd = _pick_block(n_pad, bd_cap)
    bs = _pick_block(n_pad, 64)
    n_i, n_j = n_pad // bd, n_pad // bs

    # Per-(dst_block, src_block) edge counts for the empty-block skip (scalar prefetch).
    mask_ds = e_slab[:, :, in_dim].astype(jnp.float32).T            # (n_dst, n_src)
    counts = mask_ds.reshape(n_i, bd, n_j, bs).sum(axis=(1, 3)).astype(jnp.int32)

    # Tiny constant matrices: per-head channel sum and head->lane expansion
    # (expansion augmented with an identity block carrying the z columns).  Built once.
    summat_np = np.zeros((hd, num_heads), np.float32)
    expaug_np = np.zeros((num_heads, hd + num_heads), np.float32)
    for hh in range(num_heads):
        summat_np[hh * out_dim:(hh + 1) * out_dim, hh] = 1.0
        expaug_np[hh, hh * out_dim:(hh + 1) * out_dim] = 1.0
        expaug_np[hh, hd + hh] = 1.0
    summat = jnp.asarray(summat_np)
    expaug = jnp.asarray(expaug_np)

    we = params["We"].astype(edge_dtype)
    be = params["be"].astype(jnp.float32).reshape(1, hd)

    # ---------------- VMEM budget (padding-aware) ----------------
    def _rup(a, m):
        return -(-a // m) * m
    lane = 128
    ebytes = jnp.dtype(edge_dtype).itemsize
    need = (
        2 * bs * _rup(bd, 16) * _rup(in_dim + 1, lane) * ebytes          # edge slab blocks
        + 2 * (_rup(bd, 8) + 2 * _rup(bs, 8)) * lane * 4                  # q / k / v_aug blocks
        + 2 * (_rup(in_dim, 8) + _rup(hd, 8) + _rup(num_heads, 8) + 8) * lane * 4  # weights
        + 2 * _rup(bd, 8) * lane * 4                                      # output block
        + _rup(bd, 8) * lane * 4                                          # accumulator scratch
        + 4 * bs * _rup(bd, 8) * lane * 4                                 # spilled 3-D temps
    )
    try:
        cap = int(pltpu.get_tpu_info().vmem_capacity_bytes)
    except Exception:
        cap = 64 * 1024 * 1024                                            # v7x worst case
    vmem_limit = int(min(max(2 * need, 32 * 1024 * 1024), int(0.75 * cap)))

    cost = pl.CostEstimate(
        flops=int(2 * n_pad * n_pad * (in_dim * hd + hd * num_heads
                                       + num_heads * (hd + num_heads))
                  + 8 * n_pad * n_pad * hd
                  + 6 * n_pad * in_dim * hd),
        transcendentals=int(n_pad * n_pad * num_heads),
        bytes_accessed=int(e_slab.size * ebytes
                           + (q.size + k.size + v_aug.size) * 4
                           + n_pad * hd * 4),
    )

    grid_spec = pltpu.PrefetchScalarGridSpec(
        num_scalar_prefetch=1,
        grid=(n_i, n_j),
        in_specs=[
            pl.BlockSpec((bd, hd), lambda i, j, c: (i, 0)),                      # Q (dst)
            pl.BlockSpec((bs, hd), lambda i, j, c: (j, 0)),                      # K (src, pre-scaled)
            pl.BlockSpec((bs, hd + num_heads), lambda i, j, c: (j, 0)),          # V_aug (src)
            pl.BlockSpec((bs, bd, in_dim + 1), lambda i, j, c: (j, i, 0)),       # edge slab + mask ch.
            pl.BlockSpec((hd, num_heads), lambda i, j, c: (0, 0)),               # summat
            pl.BlockSpec((num_heads, hd + num_heads), lambda i, j, c: (0, 0)),   # expmat_aug
            pl.BlockSpec((in_dim, hd), lambda i, j, c: (0, 0)),                  # We
            pl.BlockSpec((1, hd), lambda i, j, c: (0, 0)),                       # be
        ],
        out_specs=pl.BlockSpec((bd, hd), lambda i, j, c: (i, 0)),
        scratch_shapes=[pltpu.VMEM((bd, hd + num_heads), jnp.float32)],          # wV | z
    )

    out = pl.pallas_call(
        san_mha_kernel,
        out_shape=jax.ShapeDtypeStruct((n_pad, hd), jnp.float32),
        grid_spec=grid_spec,
        compiler_params=pltpu.CompilerParams(
            dimension_semantics=("parallel", "arbitrary"),
            vmem_limit_bytes=vmem_limit),
        cost_estimate=cost,
    )(counts, q, k, v_aug, e_slab, summat, expaug, we, be)

    return out[:n].reshape(n, num_heads, out_dim)


def reference_forward(h, e_feat, src, dst, params, out_dim, num_heads, num_nodes):
    # Pure-JAX edge-list reference reproducing the DGL semantics (same bf16 edge-projection
    # quantization as the kernel so the comparison is apples-to-apples).
    Qh = (jnp.dot(h, params["Wq"]) + params["bq"]).reshape(num_nodes, num_heads, out_dim)
    Kh = (jnp.dot(h, params["Wk"]) + params["bk"]).reshape(num_nodes, num_heads, out_dim)
    Vh = (jnp.dot(h, params["Wv"]) + params["bv"]).reshape(num_nodes, num_heads, out_dim)
    E = (jnp.dot(e_feat.astype(jnp.bfloat16), params["We"].astype(jnp.bfloat16),
                 preferred_element_type=jnp.float32)
         + params["be"]).reshape(-1, num_heads, out_dim)

    score = Kh[src] * Qh[dst]                                   # src_dot_dst
    score = score / np.sqrt(out_dim)                            # scaling
    score = score * E                                           # imp_exp_attn
    score_soft = jnp.exp(jnp.clip(score.sum(-1, keepdims=True), -5.0, 5.0))   # exp
    wV = jax.ops.segment_sum(Vh[src] * score_soft, dst, num_segments=num_nodes)
    z = jax.ops.segment_sum(score_soft, dst, num_segments=num_nodes)
    return wV / (z + 1e-6)


if __name__ == "__main__":
    key = jax.random.PRNGKey(0)
    N, in_dim, out_dim, num_heads = 16, 32, 8, 4
    HD = out_dim * num_heads

    # Deterministic small graph: node i -> (i+1)%N, (i+3)%N, (i+7)%N  (unique pairs).
    offs = np.array([1, 3, 7])
    src = np.repeat(np.arange(N), len(offs))
    dst = (src + np.tile(offs, N)) % N
    Ne = src.shape[0]

    ks = jax.random.split(key, 10)
    params = {
        "Wq": jax.random.normal(ks[0], (in_dim, HD), jnp.float32) * 0.1,
        "bq": jax.random.normal(ks[1], (1, HD), jnp.float32) * 0.1,
        "Wk": jax.random.normal(ks[2], (in_dim, HD), jnp.float32) * 0.1,
        "bk": jax.random.normal(ks[3], (1, HD), jnp.float32) * 0.1,
        "We": jax.random.normal(ks[4], (in_dim, HD), jnp.float32) * 0.1,
        "be": jax.random.normal(ks[5], (1, HD), jnp.float32) * 0.1,
        "Wv": jax.random.normal(ks[6], (in_dim, HD), jnp.float32) * 0.1,
        "bv": jax.random.normal(ks[7], (1, HD), jnp.float32) * 0.1,
    }
    h = jax.random.normal(ks[8], (N, in_dim), jnp.float32)
    e_feat = jax.random.normal(ks[9], (Ne, in_dim), jnp.float32)

    src_j = jnp.asarray(src)
    dst_j = jnp.asarray(dst)

    out = san_mha_forward(h, e_feat, src_j, dst_j, params, out_dim, num_heads)
    out = jax.block_until_ready(out)

    ref = reference_forward(h, e_feat, src_j, dst_j, params, out_dim, num_heads, N)
    ref = jax.block_until_ready(ref)

    np.testing.assert_allclose(np.asarray(out), np.asarray(ref), rtol=1e-2, atol=1e-2)
    print("KERNEL_OK")
</pallas_src>

<mosaic_0001>
module attributes {stable_mosaic.version = 11 : i64} {
  func.func @san_mha_kernel(%arg0: i32, %arg1: i32, %arg2: memref<1x1xi32, #tpu.memory_space<smem>>, %arg3: memref<16x32xf32, #tpu.memory_space<vmem>>, %arg4: memref<16x32xf32, #tpu.memory_space<vmem>>, %arg5: memref<16x36xf32, #tpu.memory_space<vmem>>, %arg6: memref<16x16x33xbf16, #tpu.memory_space<vmem>>, %arg7: memref<32x4xf32, #tpu.memory_space<vmem>>, %arg8: memref<4x36xf32, #tpu.memory_space<vmem>>, %arg9: memref<32x32xbf16, #tpu.memory_space<vmem>>, %arg10: memref<1x32xf32, #tpu.memory_space<vmem>>, %arg11: memref<16x32xf32, #tpu.memory_space<vmem>>, %arg12: memref<16x36xf32, #tpu.memory_space<vmem>>) attributes {dimension_semantics = [#tpu.dimension_semantics<parallel>, #tpu.dimension_semantics<arbitrary>], iteration_bounds = array<i64: 1, 1>, scalar_prefetch = 1 : i64, scratch_operands = 1 : i64, tpu.core_type = #tpu.core_type<tc>, window_params = [{transform_indices = @transform_0, window_bounds = array<i64: 16, 32>}, {transform_indices = @transform_1, window_bounds = array<i64: 16, 32>}, {transform_indices = @transform_2, window_bounds = array<i64: 16, 36>}, {transform_indices = @transform_3, window_bounds = array<i64: 16, 16, 33>}, {pipeline_mode = #tpu.pipeline_mode<synchronous>, transform_indices = @transform_4, window_bounds = array<i64: 32, 4>}, {pipeline_mode = #tpu.pipeline_mode<synchronous>, transform_indices = @transform_5, window_bounds = array<i64: 4, 36>}, {pipeline_mode = #tpu.pipeline_mode<synchronous>, transform_indices = @transform_6, window_bounds = array<i64: 32, 32>}, {pipeline_mode = #tpu.pipeline_mode<synchronous>, transform_indices = @transform_7, window_bounds = array<i64: 1, 32>}, {transform_indices = @transform_8, window_bounds = array<i64: 16, 32>}]} {
    %c0_i32 = arith.constant 0 : i32
    %0 = arith.cmpi eq, %arg1, %c0_i32 : i32
    %1 = arith.extui %0 : i1 to i32
    %c0_i32_0 = arith.constant 0 : i32
    %2 = arith.cmpi ne, %1, %c0_i32_0 : i32
    scf.if %2 {
      %cst = arith.constant 0.000000e+00 : f32
      %12 = vector.broadcast %cst : f32 to vector<16x36xf32>
      %c0 = arith.constant 0 : index
      %c0_5 = arith.constant 0 : index
      %13 = vector.load %arg12[%c0, %c0_5] : memref<16x36xf32, #tpu.memory_space<vmem>>, vector<16x36xf32>
      tpu.vector_store %arg12[%c0, %c0_5], %12 {strides = array<i32>} : memref<16x36xf32, #tpu.memory_space<vmem>>, vector<16x36xf32>,
    } else {
    }
    %3 = arith.index_cast %arg0 : i32 to index
    %4 = arith.index_cast %arg1 : i32 to index
    %5 = memref.load %arg2[%3, %4] : memref<1x1xi32, #tpu.memory_space<smem>>
    %c0_i32_1 = arith.constant 0 : i32
    %6 = arith.cmpi sgt, %5, %c0_i32_1 : i32
    %7 = arith.extui %6 : i1 to i32
    %c0_i32_2 = arith.constant 0 : i32
    %8 = arith.cmpi ne, %7, %c0_i32_2 : i32
    scf.if %8 {
      %c0 = arith.constant 0 : index
      %c0_5 = arith.constant 0 : index
      %c0_6 = arith.constant 0 : index
      %12 = vector.load %arg6[%c0, %c0_5, %c0_6] : memref<16x16x33xbf16, #tpu.memory_space<vmem>>, vector<16x16x33xbf16>
      %13 = vector.extract_strided_slice %12 {offsets = [0, 0, 0], sizes = [16, 16, 32], strides = [1, 1, 1]} : vector<16x16x33xbf16> to vector<16x16x32xbf16>
      %14 = vector.extract_strided_slice %12 {offsets = [0, 0, 32], sizes = [16, 16, 1], strides = [1, 1, 1]} : vector<16x16x33xbf16> to vector<16x16x1xbf16>
      %15 = arith.extf %14 : vector<16x16x1xbf16> to vector<16x16x1xf32>
      %16 = vector.shape_cast %13 : vector<16x16x32xbf16> to vector<256x32xbf16>
      %c0_7 = arith.constant 0 : index
      %c0_8 = arith.constant 0 : index
      %17 = vector.load %arg9[%c0_7, %c0_8] : memref<32x32xbf16, #tpu.memory_space<vmem>>, vector<32x32xbf16>
      %cst = arith.constant dense<0.000000e+00> : vector<256x32xf32>
      %18 = tpu.matmul %16, %17, %cst {dimension_numbers = #tpu.dot_dimension_numbers<[1], [0], [0], [1], [0, 0, 1, 1], [], []>} : vector<256x32xbf16>, vector<32x32xbf16>, vector<256x32xf32> -> vector<256x32xf32>
      %c0_9 = arith.constant 0 : index
      %c0_10 = arith.constant 0 : index
      %19 = vector.load %arg10[%c0_9, %c0_10] : memref<1x32xf32, #tpu.memory_space<vmem>>, vector<1x32xf32>
      %20 = vector.broadcast %19 : vector<1x32xf32> to vector<256x32xf32>
      %21 = arith.addf %18, %20 : vector<256x32xf32>
      %22 = vector.shape_cast %21 : vector<256x32xf32> to vector<16x16x32xf32>
      %c0_11 = arith.constant 0 : index
      %c0_12 = arith.constant 0 : index
      %23 = vector.load %arg4[%c0_11, %c0_12] : memref<16x32xf32, #tpu.memory_space<vmem>>, vector<16x32xf32>
      %24 = vector.shape_cast %23 : vector<16x32xf32> to vector<16x1x32xf32>
      %25 = vector.broadcast %24 : vector<16x1x32xf32> to vector<16x16x32xf32>
      %26 = arith.mulf %22, %25 : vector<16x16x32xf32>
      %c0_13 = arith.constant 0 : index
      %c0_14 = arith.constant 0 : index
      %27 = vector.load %arg3[%c0_13, %c0_14] : memref<16x32xf32, #tpu.memory_space<vmem>>, vector<16x32xf32>
      %28 = vector.shape_cast %27 : vector<16x32xf32> to vector<1x16x32xf32>
      %29 = vector.broadcast %28 : vector<1x16x32xf32> to vector<16x16x32xf32>
      %30 = arith.mulf %26, %29 : vector<16x16x32xf32>
      %31 = vector.shape_cast %30 : vector<16x16x32xf32> to vector<256x32xf32>
      %c0_15 = arith.constant 0 : index
      %c0_16 = arith.constant 0 : index
      %32 = vector.load %arg7[%c0_15, %c0_16] : memref<32x4xf32, #tpu.memory_space<vmem>>, vector<32x4xf32>
      %cst_17 = arith.constant dense<0.000000e+00> : vector<256x4xf32>
      %33 = tpu.matmul %31, %32, %cst_17 {dimension_numbers = #tpu.dot_dimension_numbers<[1], [0], [0], [1], [0, 0, 1, 1], [], []>} : vector<256x32xf32>, vector<32x4xf32>, vector<256x4xf32> -> vector<256x4xf32>
      %cst_18 = arith.constant -5.000000e+00 : f32
      %cst_19 = arith.constant 5.000000e+00 : f32
      %34 = vector.broadcast %cst_18 : f32 to vector<256x4xf32>
      %35 = arith.maximumf %34, %33 : vector<256x4xf32>
      %36 = vector.broadcast %cst_19 : f32 to vector<256x4xf32>
      %37 = arith.minimumf %36, %35 : vector<256x4xf32>
      %38 = math.exp %37 : vector<256x4xf32>
      %c0_20 = arith.constant 0 : index
      %c0_21 = arith.constant 0 : index
      %39 = vector.load %arg8[%c0_20, %c0_21] : memref<4x36xf32, #tpu.memory_space<vmem>>, vector<4x36xf32>
      %cst_22 = arith.constant dense<0.000000e+00> : vector<256x36xf32>
      %40 = tpu.matmul %38, %39, %cst_22 {dimension_numbers = #tpu.dot_dimension_numbers<[1], [0], [0], [1], [0, 0, 1, 1], [], []>} : vector<256x4xf32>, vector<4x36xf32>, vector<256x36xf32> -> vector<256x36xf32>
      %41 = vector.shape_cast %40 : vector<256x36xf32> to vector<16x16x36xf32>
      %42 = vector.broadcast %15 : vector<16x16x1xf32> to vector<16x16x36xf32>
      %43 = arith.mulf %41, %42 : vector<16x16x36xf32>
      %c0_23 = arith.constant 0 : index
      %c0_24 = arith.constant 0 : index
      %44 = vector.load %arg5[%c0_23, %c0_24] : memref<16x36xf32, #tpu.memory_space<vmem>>, vector<16x36xf32>
      %45 = vector.shape_cast %44 : vector<16x36xf32> to vector<16x1x36xf32>
      %46 = vector.broadcast %45 : vector<16x1x36xf32> to vector<16x16x36xf32>
      %47 = arith.mulf %43, %46 : vector<16x16x36xf32>
      %c0_25 = arith.constant 0 : index
      %c0_26 = arith.constant 0 : index
      %48 = vector.load %arg12[%c0_25, %c0_26] : memref<16x36xf32, #tpu.memory_space<vmem>>, vector<16x36xf32>
      %cst_27 = arith.constant dense<0.000000e+00> : vector<16x36xf32>
      %49 = vector.multi_reduction <add>, %47, %cst_27 [0] : vector<16x16x36xf32> to vector<16x36xf32>
      %50 = arith.addf %48, %49 : vector<16x36xf32>
      %c0_28 = arith.constant 0 : index
      %c0_29 = arith.constant 0 : index
      %51 = vector.load %arg12[%c0_28, %c0_29] : memref<16x36xf32, #tpu.memory_space<vmem>>, vector<16x36xf32>
      tpu.vector_store %arg12[%c0_28, %c0_29], %50 {strides = array<i32>} : memref<16x36xf32, #tpu.memory_space<vmem>>, vector<16x36xf32>,
    } else {
    }
    %c0_i32_3 = arith.constant 0 : i32
    %9 = arith.cmpi eq, %arg1, %c0_i32_3 : i32
    %10 = arith.extui %9 : i1 to i32
    %c0_i32_4 = arith.constant 0 : i32
    %11 = arith.cmpi ne, %10, %c0_i32_4 : i32
    scf.if %11 {
      %c0 = arith.constant 0 : index
      %c0_5 = arith.constant 0 : index
      %12 = vector.load %arg12[%c0, %c0_5] : memref<16x36xf32, #tpu.memory_space<vmem>>, vector<16x32xf32>
      %c0_6 = arith.constant 0 : index
      %c32 = arith.constant 32 : index
      %13 = vector.load %arg12[%c0_6, %c32] : memref<16x36xf32, #tpu.memory_space<vmem>>, vector<16x4xf32>
      %cst = arith.constant 9.99999997E-7 : f32
      %14 = vector.broadcast %cst : f32 to vector<16x4xf32>
      %15 = arith.addf %13, %14 : vector<16x4xf32>
      %16 = tpu.reciprocal %15 {approx = true} : vector<16x4xf32> -> vector<16x4xf32>
      %c0_7 = arith.constant 0 : index
      %c0_8 = arith.constant 0 : index
      %17 = vector.load %arg8[%c0_7, %c0_8] : memref<4x36xf32, #tpu.memory_space<vmem>>, vector<4x32xf32>
      %cst_9 = arith.constant dense<0.000000e+00> : vector<16x32xf32>
      %18 = tpu.matmul %16, %17, %cst_9 {dimension_numbers = #tpu.dot_dimension_numbers<[1], [0], [0], [1], [0, 0, 1, 1], [], []>} : vector<16x4xf32>, vector<4x32xf32>, vector<16x32xf32> -> vector<16x32xf32>
      %19 = arith.mulf %12, %18 : vector<16x32xf32>
      %c0_10 = arith.constant 0 : index
      %c0_11 = arith.constant 0 : index
      %20 = vector.load %arg11[%c0_10, %c0_11] : memref<16x32xf32, #tpu.memory_space<vmem>>, vector<16x32xf32>
      tpu.vector_store %arg11[%c0_10, %c0_11], %19 {strides = array<i32>} : memref<16x32xf32, #tpu.memory_space<vmem>>, vector<16x32xf32>,
    } else {
    }
    return
  }
  func.func @transform_0(%arg0: i32, %arg1: i32, %arg2: memref<1x1xi32, #tpu.memory_space<smem>>) -> (i32, i32) {
    %c0_i32 = arith.constant 0 : i32
    %c0_i32_0 = arith.constant 0 : i32
    return %arg0, %c0_i32 : i32, i32
  }
  func.func @transform_1(%arg0: i32, %arg1: i32, %arg2: memref<1x1xi32, #tpu.memory_space<smem>>) -> (i32, i32) {
    %c0_i32 = arith.constant 0 : i32
    %c0_i32_0 = arith.constant 0 : i32
    return %arg1, %c0_i32 : i32, i32
  }
  func.func @transform_2(%arg0: i32, %arg1: i32, %arg2: memref<1x1xi32, #tpu.memory_space<smem>>) -> (i32, i32) {
    %c0_i32 = arith.constant 0 : i32
    %c0_i32_0 = arith.constant 0 : i32
    return %arg1, %c0_i32 : i32, i32
  }
  func.func @transform_3(%arg0: i32, %arg1: i32, %arg2: memref<1x1xi32, #tpu.memory_space<smem>>) -> (i32, i32, i32) {
    %c0_i32 = arith.constant 0 : i32
    %c0_i32_0 = arith.constant 0 : i32
    return %arg1, %arg0, %c0_i32 : i32, i32, i32
  }
  func.func @transform_4(%arg0: i32, %arg1: i32, %arg2: memref<1x1xi32, #tpu.memory_space<smem>>) -> (i32, i32) {
    %c0_i32 = arith.constant 0 : i32
    %c0_i32_0 = arith.constant 0 : i32
    %c0_i32_1 = arith.constant 0 : i32
    return %c0_i32, %c0_i32_0 : i32, i32
  }
  func.func @transform_5(%arg0: i32, %arg1: i32, %arg2: memref<1x1xi32, #tpu.memory_space<smem>>) -> (i32, i32) {
    %c0_i32 = arith.constant 0 : i32
    %c0_i32_0 = arith.constant 0 : i32
    %c0_i32_1 = arith.constant 0 : i32
    return %c0_i32, %c0_i32_0 : i32, i32
  }
  func.func @transform_6(%arg0: i32, %arg1: i32, %arg2: memref<1x1xi32, #tpu.memory_space<smem>>) -> (i32, i32) {
    %c0_i32 = arith.constant 0 : i32
    %c0_i32_0 = arith.constant 0 : i32
    %c0_i32_1 = arith.constant 0 : i32
    return %c0_i32, %c0_i32_0 : i32, i32
  }
  func.func @transform_7(%arg0: i32, %arg1: i32, %arg2: memref<1x1xi32, #tpu.memory_space<smem>>) -> (i32, i32) {
    %c0_i32 = arith.constant 0 : i32
    %c0_i32_0 = arith.constant 0 : i32
    %c0_i32_1 = arith.constant 0 : i32
    return %c0_i32, %c0_i32_0 : i32, i32
  }
  func.func @transform_8(%arg0: i32, %arg1: i32, %arg2: memref<1x1xi32, #tpu.memory_space<smem>>) -> (i32, i32) {
    %c0_i32 = arith.constant 0 : i32
    %c0_i32_0 = arith.constant 0 : i32
    return %arg0, %c0_i32 : i32, i32
  }
}

</mosaic_0001>

<bundles_post_ra>
// kernel: tpu_custom_call.1
= control target key start
LH: loop header
LB: loop body
LE: loop exit
PB: predicated region body
PF: predicated region fallthrough
CT: control target
= control target key end

     0   :  { %15 = vsyncpa [#allocation6], 0  ;;  %s2328_s0 = inlined_call_operand.<no memory space> [shape: s32[1,1], index: 0, kind: input, shape index: {}]   ;;  %s2329_s1 = inlined_call_operand.vmem [shape: f32[16,32], index: 1, kind: input, shape index: {}]   ;;  %s2330_s2 = inlined_call_operand.vmem [shape: f32[16,32], index: 2, kind: input, shape index: {}]   ;;  %s2331_s3 = inlined_call_operand.hbm [shape: f32[16,36], index: 3, kind: input, shape index: {}]   ;;  %s2332_s4 = inlined_call_operand.hbm [shape: bf16[16,16,33], index: 4, kind: input, shape index: {}]   ;;  %s2333_s5 = inlined_call_operand.vmem [shape: f32[32,4], index: 5, kind: input, shape index: {}]   ;;  %s2334_s6 = inlined_call_operand.vmem [shape: f32[4,36], index: 6, kind: input, shape index: {}]   ;;  %s2335_s7 = inlined_call_operand.hbm [shape: bf16[32,32], index: 7, kind: input, shape index: {}]   ;;  %s2336_s8 = inlined_call_operand.vmem [shape: f32[1,32], index: 8, kind: input, shape index: {}]   ;;  %s2337_s9 = inlined_call_operand.hbm [shape: f32[16,32], index: 9, kind: output, shape index: {}]  }
   0x1   :  { %16 = vsyncpa [#allocation9], 0  ;;  %s39_s11 = sshll.u32 %s2332_s4, 4  ;;  %s40_s11 = int_to_ptr.hbm [resolvable:$true] %s39_s11 }
   0x2   :  { %17 = vsyncpa [#allocation7], 0  ;;  %s1965_s12 = smov [#allocation8]   ;;  %s26_s16 = sshll.u32 %s2331_s3, 4  ;;  %s27_s16 = int_to_ptr.hbm [resolvable:$true] %s26_s16 }
   0x3   :  { %s41_s13 = sshll.u32 %s1965_s12, 4  ;;  %s1966_s17 = smov 64   ;;  %s42_s13 = int_to_ptr.vmem [resolvable:$true] %s41_s13 }
   0x4   :  { %s1967_s18 = smov 4   ;;  %s1968_s19 = smov [#allocation5]  }
   0x5   :  { %47 = dma.hbm_to_vmem [thread:$0]  %s40_s11, 2048, %s42_s13, [#allocation9], %s1966_s17, %s1966_s17, %s1967_s18  }
   0x6   :  { %s28_s20 = sshll.u32 %s1968_s19, 4  ;;  %s1969_s21 = smov 128   ;;  %s29_s20 = int_to_ptr.vmem [resolvable:$true] %s28_s20 }
   0x7   :  { %s1970_s22 = smov 8   ;;  %s56_s24 = sshll.u32 %s2335_s7, 4  ;;  %s57_s24 = int_to_ptr.hbm [resolvable:$true] %s56_s24 }
   0x8   :  { %34 = dma.hbm_to_vmem [thread:$0]  %s27_s16, 256, %s29_s20, [#allocation6], %s1969_s21, %s1969_s21, %s1970_s22  }
   0x9   :  { %s1971_s25 = smov [#allocation10]  }
   0xa   :  { %s58_s3 = sshll.u32 %s1971_s25, 4  ;;  %s59_s3 = int_to_ptr.vmem [resolvable:$true] %s58_s3 }
   0xb   :  { %64 = dma.hbm_to_vmem [thread:$0]  %s57_s24, 256, %s59_s3, [#allocation9], %s1966_s17, %s1966_s17, %s1967_s18  }
   0xc   :  { %1959 = dma.done.wait [#allocation6], 256  }
   0xd   :  { %1960 = vsyncadd [#allocation6], 4294967040 }
   0xe   :  { %1961 = dma.done.wait [#allocation9], 2304  }
   0xf   :  { %1962 = vsyncadd [#allocation9], 4294964992  ;;  %vm84_vm0 = vcmask 293888   ;;  %v1972_v0 = vmov 0.0   ;;  %p1485_p0 = scmp.le.s32.totalorder %s2328_s0, 0 }
  0x10   :  { %85 = vst.msk [vmem:[#allocation2] sm:$0xff] %vm84_vm0, %v1972_v0 }
  0x11   :  { %86 = vst.msk [vmem:[#allocation2 + $0x8] sm:$0xff] %vm84_vm0, %v1972_v0  ;;  %94 = sbr.rel (%p1485_p0) target bundleno = 639 (0x27f), region = 53 }
  0x16   :  { %v1691_v1 = vld [vmem:[#allocation10 + $0x8] sm:$0xff]  ;;  %v1690_v2 = vld [vmem:[#allocation10] sm:$0xff]  ;;  %vm259_vm1 = vcmask 261120   ;;  %v1676_v5 = vld [vmem:[#allocation8 + $0x10] sm:$0xff]  ;;  %vm952_vm2 = vcmask 1043456   ;;  %vm855_vm3 = vcmask 31744  }
  0x17   :  { %314 = vmatpush.bf16.msra.mxu0 %v1691_v1  ;;  %1692 = vmatpush.bf16.msra.mxu3 %v1691_v1  ;;  %v1674_v3 = vld [vmem:[#allocation8] sm:$0xff]  ;;  %v1675_v4 = vld [vmem:[#allocation8 + $0x8] sm:$0xff]  ;;  %v1677_v6 = vld [vmem:[#allocation8 + $0x18] sm:$0xff] }
  0x18   :  { %v1686_v7 = vld [vmem:[#allocation8 + $0x60] sm:$0xff]  ;;  %v1687_v9 = vld [vmem:[#allocation8 + $0x68] sm:$0xff]  ;;  %v1688_v11 = vld [vmem:[#allocation8 + $0x70] sm:$0xff] }
  0x19   :  { %v1678_v8 = vld [vmem:[#allocation8 + $0x20] sm:$0xff]  ;;  %v1679_v10 = vld [vmem:[#allocation8 + $0x28] sm:$0xff]  ;;  %v1680_v12 = vld [vmem:[#allocation8 + $0x30] sm:$0xff] }
  0x1a   :  { %v516_v13 = vld [vmem:[%s2333_s5 + $0x18] sm:$0xff]  ;;  %v515_v14 = vld [vmem:[%s2333_s5 + $0x10] sm:$0xff]  ;;  %v514_v15 = vld [vmem:[%s2333_s5 + $0x8] sm:$0xff] }
  0x1b   :  { %315 = vmatpush.bf16.msra.mxu0 %v1690_v2  ;;  %1693 = vmatpush.bf16.msra.mxu3 %v1690_v2  ;;  %v513_v16 = vld [vmem:[%s2333_s5] sm:$0xff]  ;;  %v1689_v17 = vld [vmem:[#allocation8 + $0x78] sm:$0xff]  ;;  %v2091_v30 = vld [vmem:[%s2329_s1 + $0x8] sm:$0xff] }
  0x1c   :  { %625 = vmatpush.msra.mxu1 %v516_v13  ;;  %v1681_v18 = vld [vmem:[#allocation8 + $0x38] sm:$0xff]  ;;  %v2070_v19 = vld [vmem:[%s2330_s2] sm:$0xff]  ;;  %v1683_v35 = vld [vmem:[#allocation8 + $0x48] sm:$0xff] }
  0x1d   :  { %v2075_v20 = vld [vmem:[%s2336_s8] ss:$0 sm:$0xff]  ;;  %v415_v21 = vperm.slane %v2070_v19, 0  ;;  %v401_v32 = vrot.slane %v2070_v19, 1  ;;  %v402_v43 = vrot.slane %v2070_v19, 2  ;;  %v1684_v46 = vld [vmem:[#allocation8 + $0x50] sm:$0xff] }
  0x1e   :  { %1558 = vmatmul.msk.bf16.vlgmr.msra.gmra.mxu0 %vm259_vm1, %v1674_v3  ;;  %1570 = vmatmul.msk.bf16.vlgmr.msra.gmra.mxu3 %vm259_vm1, %v1686_v7  ;;  %v1682_v22 = vld [vmem:[#allocation8 + $0x40] sm:$0xff]  ;;  %v403_v54 = vrot.slane %v2070_v19, 3  ;;  %v1685_v57 = vld [vmem:[#allocation8 + $0x58] sm:$0xff]  ;;  %v404_v1 = vrot.slane %v2070_v19, 4  ;;  %v2122_v3 = vld [vmem:[%s2330_s2 + $0x8] sm:$0xff] }
  0x1f   :  { %1694 = vmatpush.msrb.mxu3 %v516_v13  ;;  %626 = vmatpush.msra.mxu1 %v515_v14  ;;  %v2082_v25 = vld [vmem:[%s2329_s1] sm:$0xff]  ;;  %v416_v34 = vperm.slane %v401_v32, 0  ;;  %v417_v45 = vperm.slane %v402_v43, 0 }
  0x20   :  { %v418_v56 = vperm.slane %v403_v54, 0 }
  0x21   :  { %1695 = vmatpush.msrb.mxu3 %v515_v14  ;;  %627 = vmatpush.msra.mxu1 %v514_v15 }
  0x23   :  { %1696 = vmatpush.msrb.mxu3 %v514_v15  ;;  %628 = vmatpush.msra.mxu1 %v513_v16 }
  0x25   :  { %1697 = vmatpush.msrb.mxu3 %v513_v16 }
  0x2e   :  { %1559 = vmatmul.msk.bf16.gmra.mxu0 %vm259_vm1, %v1675_v4  ;;  %1571 = vmatmul.msk.bf16.gmra.mxu3 %vm259_vm1, %v1687_v9  ;;  %v419_v4 = vperm.slane %v404_v1, 0 }
  0x3e   :  { %1560 = vmatmul.msk.bf16.gmra.mxu0 %vm259_vm1, %v1676_v5  ;;  %1572 = vmatmul.msk.bf16.gmra.mxu3 %vm259_vm1, %v1688_v11  ;;  %v411_v5 = vrot.slane %v2122_v3, 4 }
  0x4e   :  { %1561 = vmatmul.msk.bf16.gmra.mxu0 %vm259_vm1, %v1677_v6  ;;  %1573 = vmatmul.msk.bf16.gmra.mxu3 %vm259_vm1, %v1689_v17 }
  0x5e   :  { %1562 = vmatmul.msk.bf16.gmra.mxu0 %vm259_vm1, %v1678_v8 }
  0x6e   :  { %1563 = vmatmul.msk.bf16.gmra.mxu0 %vm259_vm1, %v1679_v10  ;;  %v427_v10 = vperm.slane %v411_v5, 0  ;;  %v854_v5 = vld [vmem:[%s2334_s6] sm:$0xf] }
  0x6f   :  { %1638 = vmatpush.msk.msra.mxu2 %vm952_vm2, %v854_v5  ;;  %1698 = vmatpush.msk.msra.mxu3 %vm952_vm2, %v854_v5 }
  0x7e   :  { %1564 = vmatmul.msk.bf16.gmra.mxu0 %vm259_vm1, %v1680_v12 }
  0x8e   :  { %1565 = vmatmul.msk.bf16.gmra.mxu0 %vm259_vm1, %v1681_v18 }
  0x9b   :  { %v317_v23 = vpop.f32.mrf.mxu0 }
  0x9c   :  { %v318_v24 = vadd.f32 %v2075_v20, %v317_v23 }
  0x9e   :  { %v447_v26 = vmul.f32 %v415_v21, %v318_v24  ;;  %1566 = vmatmul.msk.bf16.gmra.mxu0 %vm259_vm1, %v1682_v22  ;;  %v405_v22 = vrot.slane %v2070_v19, 5 }
  0xa0   :  { %v481_v27 = vmul.f32 %v2082_v25, %v447_v26 }
  0xa1   :  { %v377_v7 = vpop.f32.mrf.mxu3 }
  0xa2   :  { %1574 = vmatmul.msk.f32.vlgmr.msra.gmra.mxu1 %vm259_vm1, %v481_v27  ;;  %v378_v9 = vadd.f32 %v2075_v20, %v377_v7  ;;  %v420_v27 = vperm.slane %v405_v22, 0  ;;  %v414_v7 = vrot.slane %v2122_v3, 7  ;;  %v95_v22 = vld [vmem:[#allocation8] sm:$0xff]  }
  0xa3   :  { %v319_v28 = vpop.f32.mrf.mxu0 }
  0xa4   :  { %v320_v29 = vadd.f32 %v2075_v20, %v319_v28  ;;  %v471_v12 = vmul.f32 %v427_v10, %v378_v9  ;;  %v412_v28 = vrot.slane %v2122_v3, 5 }
  0xa6   :  { %v448_v31 = vmul.f32 %v415_v21, %v320_v29  ;;  %v505_v14 = vmul.f32 %v2082_v25, %v471_v12 }
  0xa8   :  { %v482_v33 = vmul.f32 %v2091_v30, %v448_v31  ;;  %1598 = vmatmul.msk.f32.vlgmr.msrb.gmra.mxu3 %vm259_vm1, %v505_v14 }
  0xa9   :  { %v379_v16 = vpop.f32.mrf.mxu3 }
  0xaa   :  { %1575 = vmatmul.msk.f32.gmra.mxu1 %vm259_vm1, %v482_v33  ;;  %v380_v18 = vadd.f32 %v2075_v20, %v379_v16 }
  0xab   :  { %v322_v36 = vpop.f32.mrf.mxu0 }
  0xac   :  { %v323_v37 = vadd.f32 %v2075_v20, %v322_v36  ;;  %v472_v23 = vmul.f32 %v427_v10, %v380_v18 }
  0xae   :  { %v449_v38 = vmul.f32 %v416_v34, %v323_v37  ;;  %1567 = vmatmul.msk.bf16.gmra.mxu0 %vm259_vm1, %v1683_v35  ;;  %v506_v26 = vmul.f32 %v2091_v30, %v472_v23 }
  0xb0   :  { %v483_v39 = vmul.f32 %v2082_v25, %v449_v38  ;;  %1599 = vmatmul.msk.f32.gmra.mxu3 %vm259_vm1, %v506_v26  ;;  %v127_v26 = vunpack.c.l.bf16 %v95_v22 }
  0xb1   :  { %v382_v31 = vpop.f32.mrf.mxu3 }
  0xb2   :  { %1576 = vmatmul.msk.f32.gmra.mxu1 %vm259_vm1, %v483_v39  ;;  %v383_v33 = vadd.f32 %v2075_v20, %v382_v31 }
  0xb3   :  { %v324_v40 = vpop.f32.mrf.mxu0 }
  0xb4   :  { %v325_v41 = vadd.f32 %v2075_v20, %v324_v40 }
  0xb6   :  { %v450_v42 = vmul.f32 %v416_v34, %v325_v41  ;;  %v428_v34 = vperm.slane %v412_v28, 0 }
  0xb8   :  { %v484_v44 = vmul.f32 %v2091_v30, %v450_v42  ;;  %v473_v36 = vmul.f32 %v428_v34, %v383_v33  ;;  %v423_v33 = vperm.slane %v2122_v3, 0 }
  0xb9   :  { %v384_v40 = vpop.f32.mrf.mxu3 }
  0xba   :  { %1577 = vmatmul.msk.f32.gmra.mxu1 %vm259_vm1, %v484_v44  ;;  %v507_v38 = vmul.f32 %v2082_v25, %v473_v36  ;;  %v385_v42 = vadd.f32 %v2075_v20, %v384_v40  ;;  %v406_v44 = vrot.slane %v2070_v19, 6 }
  0xbb   :  { %v327_v47 = vpop.f32.mrf.mxu0 }
  0xbc   :  { %v328_v48 = vadd.f32 %v2075_v20, %v327_v47  ;;  %1600 = vmatmul.msk.f32.gmra.mxu3 %vm259_vm1, %v507_v38 }
  0xbe   :  { %v451_v49 = vmul.f32 %v417_v45, %v328_v48  ;;  %1568 = vmatmul.msk.bf16.gmra.mxu0 %vm259_vm1, %v1684_v46  ;;  %v421_v48 = vperm.slane %v406_v44, 0 }
  0xc0   :  { %v485_v50 = vmul.f32 %v2082_v25, %v451_v49  ;;  %v413_v49 = vrot.slane %v2122_v3, 6 }
  0xc2   :  { %1578 = vmatmul.msk.f32.gmra.mxu1 %vm259_vm1, %v485_v50  ;;  %v429_v54 = vperm.slane %v413_v49, 0 }
  0xc3   :  { %v329_v51 = vpop.f32.mrf.mxu0 }
  0xc4   :  { %v330_v52 = vadd.f32 %v2075_v20, %v329_v51  ;;  %v387_v51 = vpop.f32.mrf.mxu3 }
  0xc6   :  { %v452_v53 = vmul.f32 %v417_v45, %v330_v52  ;;  %v474_v45 = vmul.f32 %v428_v34, %v385_v42 }
  0xc8   :  { %v486_v55 = vmul.f32 %v2091_v30, %v452_v53  ;;  %v508_v47 = vmul.f32 %v2091_v30, %v474_v45  ;;  %v388_v53 = vadd.f32 %v2075_v20, %v387_v51  ;;  %v408_v45 = vrot.slane %v2122_v3, 1 }
  0xca   :  { %1579 = vmatmul.msk.f32.gmra.mxu1 %vm259_vm1, %v486_v55  ;;  %1601 = vmatmul.msk.f32.gmra.mxu3 %vm259_vm1, %v508_v47 }
  0xcb   :  { %v332_v58 = vpop.f32.mrf.mxu0 }
  0xcc   :  { %v333_v59 = vadd.f32 %v2075_v20, %v332_v58 }
  0xce   :  { %v453_v60 = vmul.f32 %v418_v56, %v333_v59  ;;  %1569 = vmatmul.msk.bf16.gmra.mxu0 %vm259_vm1, %v1685_v57 }
  0xd0   :  { %v487_v61 = vmul.f32 %v2082_v25, %v453_v60  ;;  %v389_v60 = vpop.f32.mrf.mxu3 }
  0xd2   :  { %1580 = vmatmul.msk.f32.gmra.mxu1 %vm259_vm1, %v487_v61 }
  0xd3   :  { %v334_v62 = vpop.f32.mrf.mxu0 }
  0xd4   :  { %v335_v63 = vadd.f32 %v2075_v20, %v334_v62  ;;  %v390_v62 = vadd.f32 %v2075_v20, %v389_v60 }
  0xd6   :  { %v454_v0 = vmul.f32 %v418_v56, %v335_v63  ;;  %v475_v56 = vmul.f32 %v429_v54, %v388_v53  ;;  %v476_v1 = vmul.f32 %v429_v54, %v390_v62  ;;  %v424_v54 = vperm.slane %v408_v45, 0 }
  0xd8   :  { %v488_v2 = vmul.f32 %v2091_v30, %v454_v0  ;;  %v509_v58 = vmul.f32 %v2082_v25, %v475_v56  ;;  %v407_v0 = vrot.slane %v2070_v19, 7  ;;  %v392_v19 = vpop.f32.mrf.mxu3 }
  0xd9   :  { %v393_v10 = vadd.f32 %v2075_v20, %v392_v19 }
  0xda   :  { %1581 = vmatmul.msk.f32.gmra.mxu1 %vm259_vm1, %v488_v2  ;;  %1602 = vmatmul.msk.f32.gmra.mxu3 %vm259_vm1, %v509_v58 }
  0xdb   :  { %v337_v6 = vpop.f32.mrf.mxu0 }
  0xdc   :  { %v338_v8 = vadd.f32 %v2075_v20, %v337_v6  ;;  %v422_v6 = vperm.slane %v407_v0, 0 }
  0xde   :  { %v455_v11 = vmul.f32 %v419_v4, %v338_v8 }
  0xe0   :  { %v489_v13 = vmul.f32 %v2082_v25, %v455_v11  ;;  %v430_v11 = vperm.slane %v414_v7, 0 }
  0xe2   :  { %1582 = vmatmul.msk.f32.gmra.mxu1 %vm259_vm1, %v489_v13  ;;  %v477_v13 = vmul.f32 %v430_v11, %v393_v10 }
  0xe3   :  { %v339_v15 = vpop.f32.mrf.mxu0 }
  0xe4   :  { %v340_v17 = vadd.f32 %v2075_v20, %v339_v15  ;;  %v511_v15 = vmul.f32 %v2082_v25, %v477_v13 }
  0xe6   :  { %v456_v21 = vmul.f32 %v419_v4, %v340_v17  ;;  %v510_v4 = vmul.f32 %v2091_v30, %v476_v1  ;;  %v394_v17 = vpop.f32.mrf.mxu3  ;;  %v99_v1 = vld [vmem:[#allocation8 + $0x10] sm:$0xff]  }
  0xe7   :  { %v131_v5 = vunpack.c.l.bf16 %v99_v1 }
  0xe8   :  { %v490_v24 = vmul.f32 %v2091_v30, %v456_v21  ;;  %1603 = vmatmul.msk.f32.gmra.mxu3 %vm259_vm1, %v510_v4  ;;  %v395_v21 = vadd.f32 %v2075_v20, %v394_v17  ;;  %v409_v4 = vrot.slane %v2122_v3, 2 }
  0xea   :  { %1583 = vmatmul.msk.f32.gmra.mxu1 %vm259_vm1, %v490_v24  ;;  %v478_v24 = vmul.f32 %v430_v11, %v395_v21 }
  0xeb   :  { %v342_v29 = vpop.f32.mrf.mxu0 }
  0xec   :  { %v343_v32 = vadd.f32 %v2075_v20, %v342_v29  ;;  %v512_v29 = vmul.f32 %v2091_v30, %v478_v24 }
  0xee   :  { %v457_v35 = vmul.f32 %v420_v27, %v343_v32  ;;  %v1973_v32 = vmov 32  }
  0xef   :  { %1711 = vset.pattern.permute.xlu0 %v1973_v32  ;;  %1722 = vset.pattern.permute.xlu1 %v1973_v32 }
  0xf0   :  { %v491_v37 = vmul.f32 %v2082_v25, %v457_v35  ;;  %1604 = vmatmul.msk.f32.gmra.mxu3 %vm259_vm1, %v511_v15  ;;  %1733 = vset.pattern.permute.xlu2 %v1973_v32 }
  0xf2   :  { %1584 = vmatmul.msk.f32.gmra.mxu1 %vm259_vm1, %v491_v37 }
  0xf3   :  { %v344_v39 = vpop.f32.mrf.mxu0 }
  0xf4   :  { %v345_v41 = vadd.f32 %v2075_v20, %v344_v39 }
  0xf6   :  { %v458_v43 = vmul.f32 %v420_v27, %v345_v41  ;;  %v128_v27 = vunpack.c.h.bf16 %v95_v22 }
  0xf8   :  { %v492_v46 = vmul.f32 %v2091_v30, %v458_v43  ;;  %v1712_v31 = vpack.i.bf16 %v128_v27, %v127_v26  ;;  %1605 = vmatmul.msk.f32.gmra.mxu3 %vm259_vm1, %v512_v29  ;;  %v97_v43 = vld [vmem:[#allocation8 + $0x8] sm:$0xff]   ;;  %v101_v26 = vld [vmem:[#allocation8 + $0x18] sm:$0xff]  }
  0xf9   :  { %v130_v47 = vunpack.c.h.bf16 %v97_v43  ;;  %v133_v29 = vunpack.c.l.bf16 %v101_v26 }
  0xfa   :  { %1585 = vmatmul.msk.f32.gmra.mxu1 %vm259_vm1, %v492_v46  ;;  %1713 = vperm.xlu0 %1711, %v1712_v31   ;;  %v129_v46 = vunpack.c.l.bf16 %v97_v43  ;;  %v134_v31 = vunpack.c.h.bf16 %v101_v26 }
  0xfb   :  { %v347_v50 = vpop.f32.mrf.mxu0 }
  0xfc   :  { %v348_v52 = vadd.f32 %v2075_v20, %v347_v50  ;;  %v1717_v51 = vpack.i.bf16 %v130_v47, %v129_v46 }
  0xfe   :  { %v459_v55 = vmul.f32 %v421_v48, %v348_v52 }
 0x100   :  { %v493_v57 = vmul.f32 %v2082_v25, %v459_v55 }
 0x102   :  { %1586 = vmatmul.msk.f32.gmra.mxu1 %vm259_vm1, %v493_v57  ;;  %1718 = vperm.xlu0 %1711, %v1717_v51  }
 0x103   :  { %v349_v59 = vpop.f32.mrf.mxu0 }
 0x104   :  { %v350_v61 = vadd.f32 %v2075_v20, %v349_v59 }
 0x106   :  { %v460_v63 = vmul.f32 %v421_v48, %v350_v61 }
 0x108   :  { %v494_v2 = vmul.f32 %v2091_v30, %v460_v63 }
 0x10a   :  { %1587 = vmatmul.msk.f32.gmra.mxu1 %vm259_vm1, %v494_v2 }
 0x10b   :  { %v352_v8 = vpop.f32.mrf.mxu0 }
 0x10c   :  { %v353_v9 = vadd.f32 %v2075_v20, %v352_v8 }
 0x10e   :  { %v461_v12 = vmul.f32 %v422_v6, %v353_v9 }
 0x110   :  { %v495_v14 = vmul.f32 %v2082_v25, %v461_v12  ;;  %v425_v12 = vperm.slane %v409_v4, 0 }
 0x112   :  { %1588 = vmatmul.msk.f32.gmra.mxu1 %vm259_vm1, %v495_v14 }
 0x113   :  { %v354_v16 = vpop.f32.mrf.mxu0 }
 0x114   :  { %v355_v18 = vadd.f32 %v2075_v20, %v354_v16 }
 0x116   :  { %v462_v23 = vmul.f32 %v422_v6, %v355_v18  ;;  %v132_v6 = vunpack.c.h.bf16 %v99_v1 }
 0x118   :  { %v496_v28 = vmul.f32 %v2091_v30, %v462_v23  ;;  %v1723_v9 = vpack.i.bf16 %v132_v6, %v131_v5 }
 0x11a   :  { %1589 = vmatmul.msk.f32.gmra.mxu1 %vm259_vm1, %v496_v28  ;;  %1724 = vperm.xlu1 %1722, %v1723_v9   ;;  %v410_v28 = vrot.slane %v2122_v3, 3 }
 0x11b   :  { %v357_v34 = vpop.f32.mrf.mxu0 }
 0x11c   :  { %v358_v35 = vadd.f32 %v2075_v20, %v357_v34 }
 0x11e   :  { %v463_v36 = vmul.f32 %v423_v33, %v358_v35  ;;  %v1728_v35 = vpack.i.bf16 %v134_v31, %v133_v29 }
 0x11f   :  { %v630_v37 = vpop.f32.mrf.mxu1 }
 0x120   :  { %v1606_v38 = vclamps-f32 %v630_v37, 5.0  ;;  %v497_v39 = vmul.f32 %v2082_v25, %v463_v36 }
 0x122   :  { %v790_v40 = vmul.f32 1.442695, %v1606_v38  ;;  %1590 = vmatmul.msk.f32.gmra.mxu1 %vm259_vm1, %v497_v39  ;;  %v426_v38 = vperm.slane %v410_v28, 0  ;;  %1729 = vperm.xlu1 %1722, %v1728_v35  }
 0x123   :  { %v359_v41 = vpop.f32.mrf.mxu0 }
 0x124   :  { %1795 = vpow2.f32 %v790_v40  ;;  %v360_v42 = vadd.f32 %v2075_v20, %v359_v41 }
 0x126   :  { %v464_v44 = vmul.f32 %v423_v33, %v360_v42 }
 0x127   :  { %v633_v48 = vpop.f32.mrf.mxu1 }
 0x128   :  { %v1607_v49 = vclamps-f32 %v633_v48, 5.0  ;;  %v498_v50 = vmul.f32 %v2091_v30, %v464_v44 }
 0x12a   :  { %v1796_v52 = vpop.eup %1795  ;;  %v792_v53 = vmul.f32 1.442695, %v1607_v49  ;;  %1591 = vmatmul.msk.f32.gmra.mxu1 %vm259_vm1, %v498_v50 }
 0x12b   :  { %v362_v55 = vpop.f32.mrf.mxu0  ;;  %1639 = vmatmul.msk.f32.vlgmr.msra.gmra.mxu2 %vm855_vm3, %v1796_v52 }
 0x12c   :  { %1797 = vpow2.f32 %v792_v53  ;;  %v363_v56 = vadd.f32 %v2075_v20, %v362_v55 }
 0x12e   :  { %v465_v57 = vmul.f32 %v424_v54, %v363_v56 }
 0x12f   :  { %v636_v58 = vpop.f32.mrf.mxu1 }
 0x130   :  { %v1608_v59 = vclamps-f32 %v636_v58, 5.0  ;;  %v499_v60 = vmul.f32 %v2082_v25, %v465_v57 }
 0x132   :  { %v1798_v61 = vpop.eup %1797  ;;  %v794_v62 = vmul.f32 1.442695, %v1608_v59  ;;  %1592 = vmatmul.msk.f32.gmra.mxu1 %vm259_vm1, %v499_v60 }
 0x133   :  { %v364_v63 = vpop.f32.mrf.mxu0  ;;  %1640 = vmatmul.msk.f32.gmra.mxu2 %vm855_vm3, %v1798_v61  ;;  %v103_v61 = vld [vmem:[#allocation8 + $0x20] sm:$0xff]  }
 0x134   :  { %1799 = vpow2.f32 %v794_v62  ;;  %v365_v0 = vadd.f32 %v2075_v20, %v364_v63  ;;  %v135_v63 = vunpack.c.l.bf16 %v103_v61 }
 0x136   :  { %v466_v2 = vmul.f32 %v424_v54, %v365_v0  ;;  %v136_v0 = vunpack.c.h.bf16 %v103_v61 }
 0x137   :  { %v639_v7 = vpop.f32.mrf.mxu1 }
 0x138   :  { %v1609_v8 = vclamps-f32 %v639_v7, 5.0  ;;  %v500_v19 = vmul.f32 %v2091_v30, %v466_v2  ;;  %v1734_v5 = vpack.i.bf16 %v136_v0, %v135_v63 }
 0x13a   :  { %v1800_v10 = vpop.eup %1799  ;;  %v796_v11 = vmul.f32 1.442695, %v1609_v8  ;;  %1593 = vmatmul.msk.f32.gmra.mxu1 %vm259_vm1, %v500_v19  ;;  %1735 = vperm.xlu2 %1733, %v1734_v5   ;;  %v107_v19 = vld [vmem:[#allocation8 + $0x30] sm:$0xff]  }
 0x13b   :  { %v367_v13 = vpop.f32.mrf.mxu0  ;;  %1641 = vmatmul.msk.f32.gmra.mxu2 %vm855_vm3, %v1800_v10  ;;  %v139_v10 = vunpack.c.l.bf16 %v107_v19 }
 0x13c   :  { %1801 = vpow2.f32 %v796_v11  ;;  %v368_v14 = vadd.f32 %v2075_v20, %v367_v13  ;;  %v140_v11 = vunpack.c.h.bf16 %v107_v19  ;;  %v119_v19 = vld [vmem:[#allocation8 + $0x60] sm:$0xff]  }
 0x13e   :  { %v467_v15 = vmul.f32 %v425_v12, %v368_v14 }
 0x13f   :  { %v642_v16 = vpop.f32.mrf.mxu1 }
 0x140   :  { %v1610_v17 = vclamps-f32 %v642_v16, 5.0  ;;  %v501_v18 = vmul.f32 %v2082_v25, %v467_v15  ;;  %v1744_v16 = vpack.i.bf16 %v140_v11, %v139_v10  ;;  %v152_v10 = vunpack.c.h.bf16 %v119_v19 }
 0x142   :  { %v1802_v21 = vpop.eup %1801  ;;  %v798_v22 = vmul.f32 1.442695, %v1610_v17  ;;  %1594 = vmatmul.msk.f32.gmra.mxu1 %vm259_vm1, %v501_v18  ;;  %1745 = vperm.xlu0 %1711, %v1744_v16  }
 0x143   :  { %v369_v23 = vpop.f32.mrf.mxu0  ;;  %1642 = vmatmul.msk.f32.gmra.mxu2 %vm855_vm3, %v1802_v21 }
 0x144   :  { %1803 = vpow2.f32 %v798_v22  ;;  %v370_v24 = vadd.f32 %v2075_v20, %v369_v23  ;;  %v105_v22 = vld [vmem:[#allocation8 + $0x28] sm:$0xff]  }
 0x145   :  { %v138_v26 = vunpack.c.h.bf16 %v105_v22 }
 0x146   :  { %v468_v27 = vmul.f32 %v425_v12, %v370_v24  ;;  %v137_v24 = vunpack.c.l.bf16 %v105_v22  ;;  %v111_v22 = vld [vmem:[#allocation8 + $0x40] sm:$0xff]  }
 0x147   :  { %v645_v32 = vpop.f32.mrf.mxu1 }
 0x148   :  { %v1611_v33 = vclamps-f32 %v645_v32, 5.0  ;;  %v502_v34 = vmul.f32 %v2091_v30, %v468_v27  ;;  %v1739_v32 = vpack.i.bf16 %v138_v26, %v137_v24  ;;  %v143_v26 = vunpack.c.l.bf16 %v111_v22 }
 0x14a   :  { %v1804_v36 = vpop.eup %1803  ;;  %v800_v37 = vmul.f32 1.442695, %v1611_v33  ;;  %1595 = vmatmul.msk.f32.gmra.mxu1 %vm259_vm1, %v502_v34  ;;  %1740 = vperm.xlu2 %1733, %v1739_v32  }
 0x14b   :  { %v372_v39 = vpop.f32.mrf.mxu0  ;;  %1643 = vmatmul.msk.f32.gmra.mxu2 %vm855_vm3, %v1804_v36  ;;  %v109_v36 = vld [vmem:[#allocation8 + $0x38] sm:$0xff]  }
 0x14c   :  { %1805 = vpow2.f32 %v800_v37  ;;  %v373_v40 = vadd.f32 %v2075_v20, %v372_v39  ;;  %v142_v39 = vunpack.c.h.bf16 %v109_v36 }
 0x14e   :  { %v469_v3 = vmul.f32 %v426_v38, %v373_v40 }
 0x14f   :  { %v648_v41 = vpop.f32.mrf.mxu1 }
 0x150   :  { %v1612_v42 = vclamps-f32 %v648_v41, 5.0  ;;  %v503_v43 = vmul.f32 %v2082_v25, %v469_v3 }
 0x152   :  { %v1806_v44 = vpop.eup %1805  ;;  %v802_v45 = vmul.f32 1.442695, %v1612_v42  ;;  %1596 = vmatmul.msk.f32.gmra.mxu1 %vm259_vm1, %v503_v43 }
 0x153   :  { %v374_v46 = vpop.f32.mrf.mxu0  ;;  %1644 = vmatmul.msk.f32.gmra.mxu2 %vm855_vm3, %v1806_v44 }
 0x154   :  { %1807 = vpow2.f32 %v802_v45  ;;  %v375_v47 = vadd.f32 %v2075_v20, %v374_v46  ;;  %v2219_v20 = vpop.f32.mrf.mxu3 }
 0x156   :  { %v470_v48 = vmul.f32 %v426_v38, %v375_v47  ;;  %v141_v38 = vunpack.c.l.bf16 %v109_v36  ;;  %v125_v36 = vld [vmem:[#allocation8 + $0x78] sm:$0xff]  }
 0x157   :  { %v651_v49 = vpop.f32.mrf.mxu1 }
 0x158   :  { %v1613_v50 = vclamps-f32 %v651_v49, 5.0  ;;  %v504_v51 = vmul.f32 %v2091_v30, %v470_v48  ;;  %v1749_v43 = vpack.i.bf16 %v142_v39, %v141_v38  ;;  %v157_v39 = vunpack.c.l.bf16 %v125_v36 }
 0x15a   :  { %v1808_v52 = vpop.eup %1807  ;;  %v804_v53 = vmul.f32 1.442695, %v1613_v50  ;;  %1597 = vmatmul.msk.f32.gmra.mxu1 %vm259_vm1, %v504_v51  ;;  %1750 = vperm.xlu1 %1722, %v1749_v43  }
 0x15b   :  { %1645 = vmatmul.msk.f32.gmra.mxu2 %vm855_vm3, %v1808_v52 }
 0x15c   :  { %1809 = vpow2.f32 %v804_v53  ;;  %v705_v60 = vpop.f32.mrf.mxu3 }
 0x15d   :  { %v1631_v62 = vclamps-f32 %v705_v60, 5.0  ;;  %v113_v60 = vld [vmem:[#allocation8 + $0x48] sm:$0xff]  }
 0x15e   :  { %v145_v61 = vunpack.c.l.bf16 %v113_v60 }
 0x15f   :  { %v654_v25 = vpop.f32.mrf.mxu1  ;;  %v840_v4 = vmul.f32 1.442695, %v1631_v62  ;;  %v146_v62 = vunpack.c.h.bf16 %v113_v60 }
 0x160   :  { %v1614_v54 = vclamps-f32 %v654_v25, 5.0 }
 0x162   :  { %v1810_v55 = vpop.eup %1809  ;;  %v806_v56 = vmul.f32 1.442695, %v1614_v54 }
 0x163   :  { %1646 = vmatmul.msk.f32.gmra.mxu2 %vm855_vm3, %v1810_v55 }
 0x164   :  { %1811 = vpow2.f32 %v806_v56  ;;  %v708_v8 = vpop.f32.mrf.mxu3 }
 0x165   :  { %v1632_v9 = vclamps-f32 %v708_v8, 5.0 }
 0x167   :  { %v657_v57 = vpop.f32.mrf.mxu1  ;;  %v842_v15 = vmul.f32 1.442695, %v1632_v9  ;;  %v151_v9 = vunpack.c.l.bf16 %v119_v19 }
 0x168   :  { %v1615_v58 = vclamps-f32 %v657_v57, 5.0 }
 0x169   :  { %v1774_v11 = vpack.i.bf16 %v152_v10, %v151_v9 }
 0x16a   :  { %v1812_v59 = vpop.eup %1811  ;;  %v808_v30 = vmul.f32 1.442695, %v1615_v58 }
 0x16b   :  { %1647 = vmatmul.msk.f32.gmra.mxu2 %vm855_vm3, %v1812_v59 }
 0x16c   :  { %1813 = vpow2.f32 %v808_v30  ;;  %v711_v21 = vpop.f32.mrf.mxu3 }
 0x16d   :  { %1815 = vpow2.f32 %v840_v4  ;;  %v1633_v23 = vclamps-f32 %v711_v21, 5.0 }
 0x16f   :  { %v660_v1 = vpop.f32.mrf.mxu1  ;;  %v844_v31 = vmul.f32 1.442695, %v1633_v23 }
 0x170   :  { %v1616_v2 = vclamps-f32 %v660_v1, 5.0  ;;  %v1759_v1 = vpack.i.bf16 %v146_v62, %v145_v61 }
 0x172   :  { %v1814_v6 = vpop.eup %1813  ;;  %v810_v7 = vmul.f32 1.442695, %v1616_v2  ;;  %1760 = vperm.xlu0 %1711, %v1759_v1  }
 0x173   :  { %1648 = vmatmul.msk.f32.gmra.mxu2 %vm855_vm3, %v1814_v6  ;;  %v1816_v13 = vpop.eup %1815 }
 0x174   :  { %1817 = vpow2.f32 %v810_v7  ;;  %1664 = vmatmul.msk.f32.vlgmr.msra.gmra.mxu3 %vm855_vm3, %v1816_v13  ;;  %v714_v35 = vpop.f32.mrf.mxu3 }
 0x175   :  { %1819 = vpow2.f32 %v842_v15  ;;  %v1634_v37 = vclamps-f32 %v714_v35, 5.0  ;;  %v121_v35 = vld [vmem:[#allocation8 + $0x68] sm:$0xff]  }
 0x176   :  { %v154_v38 = vunpack.c.h.bf16 %v121_v35 }
 0x177   :  { %v663_v12 = vpop.f32.mrf.mxu1  ;;  %v846_v42 = vmul.f32 1.442695, %v1634_v37  ;;  %v153_v37 = vunpack.c.l.bf16 %v121_v35 }
 0x178   :  { %v1617_v14 = vclamps-f32 %v663_v12, 5.0 }
 0x17a   :  { %v1818_v17 = vpop.eup %1817  ;;  %v812_v18 = vmul.f32 1.442695, %v1617_v14  ;;  %1775 = vperm.xlu0 %1711, %v1774_v11   ;;  %v117_v11 = vld [vmem:[#allocation8 + $0x58] sm:$0xff]  }
 0x17b   :  { %1649 = vmatmul.msk.f32.gmra.mxu2 %vm855_vm3, %v1818_v17  ;;  %v1820_v28 = vpop.eup %1819  ;;  %v115_v17 = vld [vmem:[#allocation8 + $0x50] sm:$0xff]  }
 0x17c   :  { %1821 = vpow2.f32 %v812_v18  ;;  %1665 = vmatmul.msk.f32.gmra.mxu3 %vm855_vm3, %v1820_v28  ;;  %v717_v46 = vpop.f32.mrf.mxu3  ;;  %v147_v18 = vunpack.c.l.bf16 %v115_v17  ;;  %v148_v21 = vunpack.c.h.bf16 %v115_v17 }
 0x17d   :  { %1823 = vpow2.f32 %v844_v31  ;;  %v1635_v47 = vclamps-f32 %v717_v46, 5.0 }
 0x17e   :  { %v1764_v24 = vpack.i.bf16 %v148_v21, %v147_v18 }
 0x17f   :  { %v666_v27 = vpop.f32.mrf.mxu1  ;;  %v848_v51 = vmul.f32 1.442695, %v1635_v47 }
 0x180   :  { %v1618_v29 = vclamps-f32 %v666_v27, 5.0  ;;  %v144_v27 = vunpack.c.h.bf16 %v111_v22  ;;  %1765 = vperm.xlu1 %1722, %v1764_v24  }
 0x182   :  { %v1822_v33 = vpop.eup %1821  ;;  %v814_v34 = vmul.f32 1.442695, %v1618_v29  ;;  %v1714_v29 = vpop.permute.xlu0 %1713  ;;  %v1754_v32 = vpack.i.bf16 %v144_v27, %v143_v26 }
 0x183   :  { %1650 = vmatmul.msk.f32.gmra.mxu2 %vm855_vm3, %v1822_v33  ;;  %v1824_v3 = vpop.eup %1823 }
 0x184   :  { %1825 = vpow2.f32 %v814_v34  ;;  %1666 = vmatmul.msk.f32.gmra.mxu3 %vm855_vm3, %v1824_v3  ;;  %v720_v25 = vpop.f32.mrf.mxu3  ;;  %1755 = vperm.xlu2 %1733, %v1754_v32  }
 0x185   :  { %1827 = vpow2.f32 %v846_v42  ;;  %v1636_v54 = vclamps-f32 %v720_v25, 5.0  ;;  %v1715_v42 = vunpack.i.l.bf16 %v1714_v29 }
 0x187   :  { %v669_v40 = vpop.f32.mrf.mxu1  ;;  %v850_v58 = vmul.f32 1.442695, %v1636_v54 }
 0x188   :  { %v1619_v41 = vclamps-f32 %v669_v40, 5.0  ;;  %v158_v40 = vunpack.c.h.bf16 %v125_v36 }
 0x18a   :  { %v1826_v44 = vpop.eup %1825  ;;  %v816_v45 = vmul.f32 1.442695, %v1619_v41  ;;  %v1779_v41 = vpack.i.bf16 %v154_v38, %v153_v37  ;;  %v1719_v47 = vpop.permute.xlu0 %1718 }
 0x18b   :  { %1651 = vmatmul.msk.f32.gmra.mxu2 %vm855_vm3, %v1826_v44  ;;  %v1828_v49 = vpop.eup %1827  ;;  %v1789_v44 = vpack.i.bf16 %v158_v40, %v157_v39 }
 0x18c   :  { %1829 = vpow2.f32 %v816_v45  ;;  %1667 = vmatmul.msk.f32.gmra.mxu3 %vm855_vm3, %v1828_v49  ;;  %v723_v63 = vpop.f32.mrf.mxu3  ;;  %v2238_v45 = vld [vmem:[#allocation5] sm:$0xff]  ;;  %1780 = vperm.xlu1 %1722, %v1779_v41   ;;  %v1725_v19 = vpop.permute.xlu1 %1724 }
 0x18d   :  { %1831 = vpow2.f32 %v848_v51  ;;  %v1637_v0 = vclamps-f32 %v723_v63, 5.0  ;;  %1790 = vperm.xlu0 %1711, %v1789_v44   ;;  %v1266_v10 = vrot.slane %v2238_v45, 2  ;;  %v1726_v18 = vunpack.i.l.bf16 %v1725_v19 }
 0x18e   :  { %v1727_v36 = vunpack.i.h.bf16 %v1725_v19 }
 0x18f   :  { %v672_v48 = vpop.f32.mrf.mxu1  ;;  %v852_v6 = vmul.f32 1.442695, %v1637_v0  ;;  %v1721_v0 = vunpack.i.h.bf16 %v1719_v47 }
 0x190   :  { %v1620_v50 = vclamps-f32 %v672_v48, 5.0  ;;  %v1265_v48 = vrot.slane %v2238_v45, 1 }
 0x192   :  { %v1830_v52 = vpop.eup %1829  ;;  %v818_v53 = vmul.f32 1.442695, %v1620_v50  ;;  %v1280_v25 = vperm.slane %v1265_v48, 0 }
 0x193   :  { %1652 = vmatmul.msk.f32.gmra.mxu2 %vm855_vm3, %v1830_v52  ;;  %v1832_v56 = vpop.eup %1831  ;;  %v1279_v52 = vperm.slane %v2238_v45, 0 }
 0x194   :  { %1833 = vpow2.f32 %v818_v53  ;;  %1668 = vmatmul.msk.f32.gmra.mxu3 %vm855_vm3, %v1832_v56  ;;  %v1720_v53 = vunpack.i.l.bf16 %v1719_v47 }
 0x195   :  { %1835 = vpow2.f32 %v850_v58 }
 0x197   :  { %v675_v55 = vpop.f32.mrf.mxu1 }
 0x198   :  { %v1621_v57 = vclamps-f32 %v675_v55, 5.0  ;;  %v1716_v55 = vunpack.i.h.bf16 %v1714_v29 }
 0x19a   :  { %v1834_v59 = vpop.eup %1833  ;;  %v820_v30 = vmul.f32 1.442695, %v1621_v57 }
 0x19b   :  { %1653 = vmatmul.msk.f32.gmra.mxu2 %vm855_vm3, %v1834_v59  ;;  %v1836_v4 = vpop.eup %1835 }
 0x19c   :  { %1837 = vpow2.f32 %v820_v30  ;;  %1669 = vmatmul.msk.f32.gmra.mxu3 %vm855_vm3, %v1836_v4 }
 0x19d   :  { %1839 = vpow2.f32 %v852_v6 }
 0x19f   :  { %v678_v2 = vpop.f32.mrf.mxu1 }
 0x1a0   :  { %v1622_v5 = vclamps-f32 %v678_v2, 5.0 }
 0x1a2   :  { %v1838_v7 = vpop.eup %1837  ;;  %v822_v8 = vmul.f32 1.442695, %v1622_v5 }
 0x1a3   :  { %1654 = vmatmul.msk.f32.gmra.mxu2 %vm855_vm3, %v1838_v7  ;;  %v1840_v13 = vpop.eup %1839 }
 0x1a4   :  { %1841 = vpow2.f32 %v822_v8  ;;  %1670 = vmatmul.msk.f32.gmra.mxu3 %vm855_vm3, %v1840_v13 }
 0x1a7   :  { %v681_v12 = vpop.f32.mrf.mxu1 }
 0x1a8   :  { %v1623_v14 = vclamps-f32 %v681_v12, 5.0 }
 0x1aa   :  { %v1842_v15 = vpop.eup %1841  ;;  %v824_v16 = vmul.f32 1.442695, %v1623_v14  ;;  %v149_v14 = vunpack.c.l.bf16 %v117_v11 }
 0x1ab   :  { %1655 = vmatmul.msk.f32.gmra.mxu2 %vm855_vm3, %v1842_v15  ;;  %v150_v15 = vunpack.c.h.bf16 %v117_v11 }
 0x1ac   :  { %1843 = vpow2.f32 %v824_v16 }
 0x1ad   :  { %v1769_v22 = vpack.i.bf16 %v150_v15, %v149_v14  ;;  %v1269_v15 = vrot.slane %v2238_v45, 5 }
 0x1ae   :  { %v973_v23 = vpop.f32.mrf.mxu2 }
 0x1af   :  { %v684_v28 = vpop.f32.mrf.mxu1  ;;  %v1229_v51 = vmul.f32 %v1715_v42, %v973_v23  ;;  %v1281_v23 = vperm.slane %v1266_v10, 0  ;;  %1770 = vperm.xlu2 %1733, %v1769_v22  }
 0x1b0   :  { %v1624_v31 = vclamps-f32 %v684_v28, 5.0 }
 0x1b1   :  { %v1311_v56 = vmul.f32 %v1279_v52, %v1229_v51  ;;  %v1630_v51 = vclamps-f32 %v2219_v20, 5.0  ;;  %v1268_v20 = vrot.slane %v2238_v45, 4 }
 0x1b2   :  { %v1844_v33 = vpop.eup %1843  ;;  %v826_v34 = vmul.f32 1.442695, %v1624_v31  ;;  %v123_v31 = vld [vmem:[#allocation8 + $0x70] sm:$0xff]  }
 0x1b3   :  { %1656 = vmatmul.msk.f32.gmra.mxu2 %vm855_vm3, %v1844_v33  ;;  %v1346_v62 = vsel %vm84_vm0, %v1311_v56, 0.0  ;;  %v156_v35 = vunpack.c.h.bf16 %v123_v31 }
 0x1b4   :  { %1845 = vpow2.f32 %v826_v34  ;;  %v155_v34 = vunpack.c.l.bf16 %v123_v31 }
 0x1b6   :  { %v976_v3 = vpop.f32.mrf.mxu2  ;;  %v1784_v39 = vpack.i.bf16 %v156_v35, %v155_v34  ;;  %v1270_v34 = vrot.slane %v2238_v45, 6 }
 0x1b7   :  { %v687_v43 = vpop.f32.mrf.mxu1  ;;  %v1230_v63 = vmul.f32 %v1716_v55, %v976_v3  ;;  %v838_v55 = vmul.f32 1.442695, %v1630_v51 }
 0x1b8   :  { %v1625_v46 = vclamps-f32 %v687_v43, 5.0  ;;  %1785 = vperm.xlu2 %1733, %v1784_v39   ;;  %v1730_v43 = vpop.permute.xlu1 %1729 }
 0x1b9   :  { %v1312_v5 = vmul.f32 %v1279_v52, %v1230_v63 }
 0x1ba   :  { %v1846_v49 = vpop.eup %1845  ;;  %v828_v50 = vmul.f32 1.442695, %v1625_v46  ;;  %v1267_v46 = vrot.slane %v2238_v45, 3 }
 0x1bb   :  { %1657 = vmatmul.msk.f32.gmra.mxu2 %vm855_vm3, %v1846_v49  ;;  %v1377_v16 = vsel %vm84_vm0, %v1312_v5, 0.0  ;;  %v1283_v5 = vperm.slane %v1268_v20, 0 }
 0x1bc   :  { %1847 = vpow2.f32 %v828_v50  ;;  %v1731_v50 = vunpack.i.l.bf16 %v1730_v43 }
 0x1be   :  { %v979_v54 = vpop.f32.mrf.mxu2 }
 0x1bf   :  { %v1231_v57 = vmul.f32 %v1720_v53, %v979_v54  ;;  %v690_v58 = vpop.f32.mrf.mxu1  ;;  %v1282_v53 = vperm.slane %v1267_v46, 0 }
 0x1c0   :  { %v1626_v59 = vclamps-f32 %v690_v58, 5.0  ;;  %v1732_v58 = vunpack.i.h.bf16 %v1730_v43 }
 0x1c1   :  { %v1313_v30 = vmul.f32 %v1280_v25, %v1231_v57 }
 0x1c2   :  { %v1848_v60 = vpop.eup %1847  ;;  %v830_v61 = vmul.f32 1.442695, %v1626_v59 }
 0x1c3   :  { %v1347_v1 = vsel %vm84_vm0, %v1313_v30, 0.0  ;;  %1658 = vmatmul.msk.f32.gmra.mxu2 %vm855_vm3, %v1848_v60 }
 0x1c4   :  { %v1348_v2 = vadd.f32 %v1347_v1, %v1346_v62  ;;  %1849 = vpow2.f32 %v830_v61  ;;  %v1736_v62 = vpop.permute.xlu2 %1735 }
 0x1c5   :  { %v1738_v19 = vunpack.i.h.bf16 %v1736_v62 }
 0x1c6   :  { %v982_v4 = vpop.f32.mrf.mxu2 }
 0x1c7   :  { %v1232_v6 = vmul.f32 %v1721_v0, %v982_v4  ;;  %v693_v7 = vpop.f32.mrf.mxu1 }
 0x1c8   :  { %v1627_v8 = vclamps-f32 %v693_v7, 5.0 }
 0x1c9   :  { %v1314_v9 = vmul.f32 %v1280_v25, %v1232_v6 }
 0x1ca   :  { %v1850_v12 = vpop.eup %1849  ;;  %v832_v13 = vmul.f32 1.442695, %v1627_v8 }
 0x1cb   :  { %v1378_v17 = vsel %vm84_vm0, %v1314_v9, 0.0  ;;  %1659 = vmatmul.msk.f32.gmra.mxu2 %vm855_vm3, %v1850_v12 }
 0x1cc   :  { %v1379_v21 = vadd.f32 %v1378_v17, %v1377_v16  ;;  %1851 = vpow2.f32 %v832_v13  ;;  %v1741_v13 = vpop.permute.xlu2 %1740 }
 0x1cd   :  { %v1742_v17 = vunpack.i.l.bf16 %v1741_v13 }
 0x1ce   :  { %v985_v24 = vpop.f32.mrf.mxu2 }
 0x1cf   :  { %v1233_v26 = vmul.f32 %v1726_v18, %v985_v24  ;;  %v696_v27 = vpop.f32.mrf.mxu1 }
 0x1d0   :  { %v1628_v28 = vclamps-f32 %v696_v27, 5.0 }
 0x1d1   :  { %v1315_v29 = vmul.f32 %v1281_v23, %v1233_v26  ;;  %v1743_v26 = vunpack.i.h.bf16 %v1741_v13 }
 0x1d2   :  { %v1852_v32 = vpop.eup %1851  ;;  %v834_v33 = vmul.f32 1.442695, %v1628_v28 }
 0x1d3   :  { %v1349_v37 = vsel %vm84_vm0, %v1315_v29, 0.0  ;;  %1660 = vmatmul.msk.f32.gmra.mxu2 %vm855_vm3, %v1852_v32  ;;  %v1746_v32 = vpop.permute.xlu0 %1745 }
 0x1d4   :  { %v1350_v38 = vadd.f32 %v1349_v37, %v1348_v2  ;;  %1853 = vpow2.f32 %v834_v33  ;;  %v1737_v2 = vunpack.i.l.bf16 %v1736_v62 }
 0x1d6   :  { %v988_v40 = vpop.f32.mrf.mxu2 }
 0x1d7   :  { %v1234_v3 = vmul.f32 %v1727_v36, %v988_v40  ;;  %v699_v41 = vpop.f32.mrf.mxu1  ;;  %v1747_v36 = vunpack.i.l.bf16 %v1746_v32 }
 0x1d8   :  { %v1629_v42 = vclamps-f32 %v699_v41, 5.0  ;;  %v1748_v41 = vunpack.i.h.bf16 %v1746_v32 }
 0x1d9   :  { %v1316_v44 = vmul.f32 %v1281_v23, %v1234_v3 }
 0x1da   :  { %v1854_v47 = vpop.eup %1853  ;;  %v836_v48 = vmul.f32 1.442695, %v1629_v42 }
 0x1db   :  { %v1380_v49 = vsel %vm84_vm0, %v1316_v44, 0.0  ;;  %1661 = vmatmul.msk.f32.gmra.mxu2 %vm855_vm3, %v1854_v47  ;;  %v1751_v47 = vpop.permute.xlu1 %1750 }
 0x1dc   :  { %v1381_v52 = vadd.f32 %v1380_v49, %v1379_v21  ;;  %1855 = vpow2.f32 %v836_v48  ;;  %v1284_v21 = vperm.slane %v1269_v15, 0  ;;  %v1271_v49 = vrot.slane %v2238_v45, 7 }
 0x1dd   :  { %1857 = vpow2.f32 %v838_v55  ;;  %v1752_v51 = vunpack.i.l.bf16 %v1751_v47 }
 0x1de   :  { %v991_v25 = vpop.f32.mrf.mxu2 }
 0x1df   :  { %v1235_v54 = vmul.f32 %v1731_v50, %v991_v25 }
 0x1e1   :  { %v1317_v56 = vmul.f32 %v1282_v53, %v1235_v54 }
 0x1e2   :  { %v1856_v57 = vpop.eup %1855 }
 0x1e3   :  { %v1351_v59 = vsel %vm84_vm0, %v1317_v56, 0.0  ;;  %1662 = vmatmul.msk.f32.gmra.mxu2 %vm855_vm3, %v1856_v57  ;;  %v1858_v0 = vpop.eup %1857 }
 0x1e4   :  { %v1352_v30 = vadd.f32 %v1351_v59, %v1350_v38  ;;  %v1285_v38 = vperm.slane %v1270_v34, 0 }
 0x1e6   :  { %v994_v60 = vpop.f32.mrf.mxu2 }
 0x1e7   :  { %v1236_v61 = vmul.f32 %v1732_v58, %v994_v60 }
 0x1e9   :  { %v1318_v63 = vmul.f32 %v1282_v53, %v1236_v61  ;;  %v1286_v53 = vperm.slane %v1271_v49, 0 }
 0x1eb   :  { %v1382_v1 = vsel %vm84_vm0, %v1318_v63, 0.0  ;;  %1663 = vmatmul.msk.f32.gmra.mxu2 %vm855_vm3, %v1858_v0 }
 0x1ec   :  { %v1383_v4 = vadd.f32 %v1382_v1, %v1381_v52  ;;  %v1756_v1 = vpop.permute.xlu2 %1755 }
 0x1ee   :  { %v997_v6 = vpop.f32.mrf.mxu2 }
 0x1ef   :  { %v1237_v7 = vmul.f32 %v1737_v2, %v997_v6  ;;  %v1761_v2 = vpop.permute.xlu0 %1760 }
 0x1f1   :  { %v1319_v8 = vmul.f32 %v1283_v5, %v1237_v7 }
 0x1f2   :  { %v1766_v6 = vpop.permute.xlu1 %1765 }
 0x1f3   :  { %v1353_v9 = vsel %vm84_vm0, %v1319_v8, 0.0 }
 0x1f4   :  { %v1354_v10 = vadd.f32 %v1353_v9, %v1352_v30 }
 0x1f6   :  { %v1000_v11 = vpop.f32.mrf.mxu2 }
 0x1f7   :  { %v1238_v12 = vmul.f32 %v1738_v19, %v1000_v11  ;;  %v1048_v59 = vpop.f32.mrf.mxu3  ;;  %v1758_v19 = vunpack.i.h.bf16 %v1756_v1  ;;  %v1763_v11 = vunpack.i.h.bf16 %v1761_v2 }
 0x1f9   :  { %v1320_v14 = vmul.f32 %v1283_v5, %v1238_v12  ;;  %v2281_v12 = vpop.permute.xlu0 %1775 }
 0x1fb   :  { %v1384_v16 = vsel %vm84_vm0, %v1320_v14, 0.0 }
 0x1fc   :  { %v1385_v18 = vadd.f32 %v1384_v16, %v1383_v4  ;;  %v1753_v4 = vunpack.i.h.bf16 %v1751_v47  ;;  %v1757_v16 = vunpack.i.l.bf16 %v1756_v1 }
 0x1fe   :  { %v1003_v22 = vpop.f32.mrf.mxu2 }
 0x1ff   :  { %v1239_v23 = vmul.f32 %v1742_v17, %v1003_v22  ;;  %v2273_v60 = vpop.f32.mrf.mxu3 }
 0x201   :  { %v1321_v24 = vmul.f32 %v1284_v21, %v1239_v23  ;;  %v1791_v49 = vpop.permute.xlu0 %1790 }
 0x203   :  { %v1355_v27 = vsel %vm84_vm0, %v1321_v24, 0.0 }
 0x204   :  { %v1356_v28 = vadd.f32 %v1355_v27, %v1354_v10  ;;  %v2279_v10 = vld [vmem:[#allocation5 + $0x8] sm:$0xff] }
 0x205   :  { %v1272_v15 = vrot.slane %v2279_v10, 1  ;;  %v1287_v17 = vperm.slane %v2279_v10, 0  ;;  %v1273_v24 = vrot.slane %v2279_v10, 2 }
 0x206   :  { %v1006_v29 = vpop.f32.mrf.mxu2 }
 0x207   :  { %v1240_v31 = vmul.f32 %v1743_v26, %v1006_v29  ;;  %v1054_v45 = vpop.f32.mrf.mxu3  ;;  %v1762_v26 = vunpack.i.l.bf16 %v1761_v2  ;;  %v1288_v32 = vperm.slane %v1272_v15, 0 }
 0x209   :  { %v1322_v33 = vmul.f32 %v1284_v21, %v1240_v31  ;;  %v1771_v9 = vpop.permute.xlu2 %1770  ;;  %v1768_v21 = vunpack.i.h.bf16 %v1766_v6 }
 0x20b   :  { %v1386_v35 = vsel %vm84_vm0, %v1322_v33, 0.0  ;;  %v1781_v33 = vpop.permute.xlu1 %1780 }
 0x20c   :  { %v1387_v37 = vadd.f32 %v1386_v35, %v1385_v18  ;;  %v1778_v18 = vunpack.i.h.bf16 %v2281_v12 }
 0x20e   :  { %v1009_v39 = vpop.f32.mrf.mxu2 }
 0x20f   :  { %v1241_v40 = vmul.f32 %v1747_v36, %v1009_v39  ;;  %v2275_v20 = vpop.f32.mrf.mxu3  ;;  %v1276_v36 = vrot.slane %v2279_v10, 5 }
 0x211   :  { %v1323_v3 = vmul.f32 %v1285_v38, %v1241_v40  ;;  %v1289_v40 = vperm.slane %v1273_v24, 0 }
 0x213   :  { %v1357_v42 = vsel %vm84_vm0, %v1323_v3, 0.0 }
 0x214   :  { %v1358_v43 = vadd.f32 %v1357_v42, %v1356_v28  ;;  %v1275_v28 = vrot.slane %v2279_v10, 4  ;;  %v1786_v42 = vpop.permute.xlu2 %1785 }
 0x216   :  { %v1012_v44 = vpop.f32.mrf.mxu2 }
 0x217   :  { %v1242_v46 = vmul.f32 %v1748_v41, %v1012_v44  ;;  %v2277_v5 = vpop.f32.mrf.mxu3  ;;  %v1783_v41 = vunpack.i.h.bf16 %v1781_v33  ;;  %v1291_v44 = vperm.slane %v1275_v28, 0 }
 0x219   :  { %v1324_v48 = vmul.f32 %v1285_v38, %v1242_v46  ;;  %v1767_v38 = vunpack.i.l.bf16 %v1766_v6 }
 0x21b   :  { %v1388_v50 = vsel %vm84_vm0, %v1324_v48, 0.0  ;;  %v1773_v48 = vunpack.i.h.bf16 %v1771_v9 }
 0x21c   :  { %v1389_v52 = vadd.f32 %v1388_v50, %v1387_v37  ;;  %v1254_v37 = vmul.f32 %v1778_v18, %v1048_v59 }
 0x21e   :  { %v1015_v25 = vpop.f32.mrf.mxu2 }
 0x21f   :  { %v1243_v54 = vmul.f32 %v1752_v51, %v1015_v25  ;;  %v2286_v22 = vpop.f32.mrf.mxu3  ;;  %v1292_v25 = vperm.slane %v1276_v36, 0 }
 0x221   :  { %v1325_v55 = vmul.f32 %v1286_v53, %v1243_v54  ;;  %v1278_v54 = vrot.slane %v2279_v10, 7 }
 0x223   :  { %v1359_v56 = vsel %vm84_vm0, %v1325_v55, 0.0  ;;  %v1294_v15 = vperm.slane %v1278_v54, 0 }
 0x224   :  { %v2271_v57 = vadd.f32 %v1359_v56, %v1358_v43  ;;  %v1274_v43 = vrot.slane %v2279_v10, 3 }
 0x226   :  { %v1018_v58 = vpop.f32.mrf.mxu2 }
 0x227   :  { %v1244_v8 = vmul.f32 %v1753_v4, %v1018_v58  ;;  %v1788_v58 = vunpack.i.h.bf16 %v1786_v42  ;;  %v1066_v2 = vpop.f32.mrf.mxu3 }
 0x229   :  { %v1326_v13 = vmul.f32 %v1286_v53, %v1244_v8  ;;  %v1772_v53 = vunpack.i.l.bf16 %v1771_v9  ;;  %v1782_v9 = vunpack.i.l.bf16 %v1781_v33 }
 0x22b   :  { %v1390_v29 = vsel %vm84_vm0, %v1326_v13, 0.0 }
 0x22c   :  { %v1391_v3 = vadd.f32 %v1390_v29, %v1389_v52  ;;  %v1277_v52 = vrot.slane %v2279_v10, 6  ;;  %v1258_v10 = vmul.f32 %v1788_v58, %v2277_v5  ;;  %v1255_v5 = vmul.f32 %v1782_v9, %v2273_v60  ;;  %v1343_v58 = vld [vmem:[#allocation2] sm:$0xff] }
 0x22e   :  { %v1021_v30 = vpop.f32.mrf.mxu2  ;;  %v1293_v13 = vperm.slane %v1277_v52, 0 }
 0x22f   :  { %v1245_v35 = vmul.f32 %v1757_v16, %v1021_v30  ;;  %v1256_v30 = vmul.f32 %v1783_v41, %v1054_v45  ;;  %v1337_v41 = vmul.f32 %v1292_v25, %v1255_v5 }
 0x230   :  { %v1340_v33 = vmul.f32 %v1293_v13, %v1258_v10 }
 0x231   :  { %v1327_v51 = vmul.f32 %v1287_v17, %v1245_v35  ;;  %v1338_v45 = vmul.f32 %v1292_v25, %v1256_v30  ;;  %v1371_v54 = vsel %vm84_vm0, %v1337_v41, 0.0 }
 0x233   :  { %v1361_v8 = vsel %vm84_vm0, %v1327_v51, 0.0  ;;  %v1402_v35 = vsel %vm84_vm0, %v1338_v45, 0.0 }
 0x236   :  { %v1024_v61 = vpop.f32.mrf.mxu2 }
 0x237   :  { %v1246_v14 = vmul.f32 %v1758_v19, %v1024_v61  ;;  %v1793_v61 = vunpack.i.h.bf16 %v1791_v49 }
 0x239   :  { %v1328_v31 = vmul.f32 %v1287_v17, %v1246_v14  ;;  %v1260_v16 = vmul.f32 %v1793_v61, %v1066_v2 }
 0x23b   :  { %v1392_v46 = vsel %vm84_vm0, %v1328_v31, 0.0  ;;  %v1792_v31 = vunpack.i.l.bf16 %v1791_v49 }
 0x23c   :  { %v1393_v59 = vadd.f32 %v1392_v46, %v1391_v3 }
 0x23d   :  { %v1259_v60 = vmul.f32 %v1792_v31, %v2286_v22 }
 0x23e   :  { %v1027_v62 = vpop.f32.mrf.mxu2 }
 0x23f   :  { %v1247_v47 = vmul.f32 %v1762_v26, %v1027_v62  ;;  %v1362_v26 = vadd.f32 %v1361_v8, %v2271_v57 }
 0x241   :  { %v1329_v62 = vmul.f32 %v1288_v32, %v1247_v47 }
 0x243   :  { %v1363_v18 = vsel %vm84_vm0, %v1329_v62, 0.0 }
 0x246   :  { %v1030_v63 = vpop.f32.mrf.mxu2 }
 0x247   :  { %v1248_v23 = vmul.f32 %v1763_v11, %v1030_v63  ;;  %v1290_v63 = vperm.slane %v1274_v43, 0  ;;  %v1336_v11 = vmul.f32 %v1291_v44, %v1254_v37 }
 0x249   :  { %v1330_v39 = vmul.f32 %v1288_v32, %v1248_v23  ;;  %v1400_v29 = vsel %vm84_vm0, %v1336_v11, 0.0 }
 0x24b   :  { %v1394_v55 = vsel %vm84_vm0, %v1330_v39, 0.0 }
 0x24c   :  { %v1395_v19 = vadd.f32 %v1394_v55, %v1393_v59  ;;  %v1341_v55 = vmul.f32 %v1294_v15, %v1259_v60 }
 0x24e   :  { %v1033_v0 = vpop.f32.mrf.mxu2 }
 0x24f   :  { %v1249_v56 = vmul.f32 %v1767_v38, %v1033_v0  ;;  %v1342_v38 = vmul.f32 %v1294_v15, %v1260_v16 }
 0x251   :  { %v1331_v0 = vmul.f32 %v1289_v40, %v1249_v56 }
 0x253   :  { %v1365_v32 = vsel %vm84_vm0, %v1331_v0, 0.0 }
 0x256   :  { %v1036_v7 = vpop.f32.mrf.mxu2 }
 0x257   :  { %v1250_v34 = vmul.f32 %v1768_v21, %v1036_v7  ;;  %v1787_v21 = vunpack.i.l.bf16 %v1786_v42  ;;  %v1404_v42 = vsel %vm84_vm0, %v1340_v33, 0.0 }
 0x259   :  { %v1332_v50 = vmul.f32 %v1289_v40, %v1250_v34  ;;  %v1364_v34 = vadd.f32 %v1363_v18, %v1362_v26  ;;  %v1257_v39 = vmul.f32 %v1787_v21, %v2275_v20 }
 0x25b   :  { %v1396_v4 = vsel %vm84_vm0, %v1332_v50, 0.0  ;;  %v1366_v40 = vadd.f32 %v1365_v32, %v1364_v34  ;;  %v1339_v49 = vmul.f32 %v1293_v13, %v1257_v39  ;;  %v1344_v50 = vld [vmem:[#allocation2 + $0x8] sm:$0xff] }
 0x25c   :  { %v1397_v17 = vadd.f32 %v1396_v4, %v1395_v19 }
 0x25d   :  { %v1373_v22 = vsel %vm84_vm0, %v1339_v49, 0.0 }
 0x25e   :  { %v1039_v27 = vpop.f32.mrf.mxu2 }
 0x25f   :  { %v1251_v6 = vmul.f32 %v1772_v53, %v1039_v27  ;;  %v1777_v27 = vunpack.i.l.bf16 %v2281_v12 }
 0x261   :  { %v1333_v23 = vmul.f32 %v1290_v63, %v1251_v6 }
 0x263   :  { %v1367_v57 = vsel %vm84_vm0, %v1333_v23, 0.0 }
 0x264   :  { %v1368_v46 = vadd.f32 %v1367_v57, %v1366_v40 }
 0x266   :  { %v1042_v1 = vpop.f32.mrf.mxu2 }
 0x267   :  { %v1252_v7 = vmul.f32 %v1773_v48, %v1042_v1  ;;  %v1406_v48 = vsel %vm84_vm0, %v1342_v38, 0.0 }
 0x269   :  { %v1334_v14 = vmul.f32 %v1290_v63, %v1252_v7 }
 0x26b   :  { %v1398_v24 = vsel %vm84_vm0, %v1334_v14, 0.0 }
 0x26c   :  { %v1399_v28 = vadd.f32 %v1398_v24, %v1397_v17 }
 0x26e   :  { %v1045_v36 = vpop.f32.mrf.mxu2  ;;  %v1401_v37 = vadd.f32 %v1400_v29, %v1399_v28 }
 0x26f   :  { %v1253_v12 = vmul.f32 %v1777_v27, %v1045_v36 }
 0x270   :  { %v1403_v3 = vadd.f32 %v1402_v35, %v1401_v37 }
 0x271   :  { %v1335_v43 = vmul.f32 %v1291_v44, %v1253_v12  ;;  %v1375_v44 = vsel %vm84_vm0, %v1341_v55, 0.0 }
 0x272   :  { %v1405_v47 = vadd.f32 %v1404_v42, %v1403_v3 }
 0x273   :  { %v1369_v51 = vsel %vm84_vm0, %v1335_v43, 0.0 }
 0x274   :  { %v1370_v20 = vadd.f32 %v1369_v51, %v1368_v46  ;;  %v1407_v53 = vadd.f32 %v1406_v48, %v1405_v47 }
 0x276   :  { %v1372_v56 = vadd.f32 %v1371_v54, %v1370_v20  ;;  %v1409_v25 = vadd.f32 %v1407_v53, %v1344_v50 }
 0x278   :  { %v1374_v52 = vadd.f32 %v1373_v22, %v1372_v56  ;;  %1411 = vst.msk [vmem:[#allocation2 + $0x8] sm:$0xff] %vm84_vm0, %v1409_v25 }
 0x27a   :  { %v1376_v59 = vadd.f32 %v1375_v44, %v1374_v52 }
 0x27c   :  { %v1408_v30 = vadd.f32 %v1376_v59, %v1343_v58 }
 0x27e   :  { %1410 = vst.msk [vmem:[#allocation2] sm:$0xff] %vm84_vm0, %v1408_v30 }
 0x27f PF:  { %v1421_v63 = vld [vmem:[%s2334_s6] sm:$0xf]  ;;  %vm1433_vm4 = vcmask 1043456   ;;  %s1974_s24 = smov 96   ;;  %vm1428_vm5 = vcmask 31744   ;;  %vm1462_vm6 = vcmask 261120  }
 0x280   :  { %1671 = vmatpush.msk.msra.mxu0 %vm1433_vm4, %v1421_v63  ;;  %1699 = vmatpush.msk.msra.mxu1 %vm1433_vm4, %v1421_v63  ;;  %s1975_s6 = smov [#allocation11]   ;;  %s1471_s27 = sshll.u32 %s2337_s9, 4  ;;  %s1472_s27 = int_to_ptr.hbm [resolvable:$true] %s1471_s27 }
 0x281   :  { %v1416_v62 = vld [vmem:[#allocation2 + $0x8] sm:$0xff]  ;;  %s1469_s25 = sshll.u32 %s1975_s6, 4  ;;  %s1470_s25 = int_to_ptr.vmem [resolvable:$true] %s1469_s25 }
 0x282   :  { %v1418_v2 = vadd.f32 1e-06, %v1416_v62 }
 0x285   :  { %v1415_v61 = vld [vmem:[#allocation2] sm:$0xff] }
 0x286   :  { %v1417_v1 = vadd.f32 1e-06, %v1415_v61 }
 0x288   :  { %1859 = vrcp.f32 %v1417_v1 }
 0x289   :  { %1861 = vrcp.f32 %v1418_v2 }
 0x28e   :  { %v1860_v4 = vpop.eup %1859 }
 0x28f   :  { %1424 = vrot.lane.b32.xlu0 %v1860_v4, %s1974_s24  ;;  %v1862_v6 = vpop.eup %1861 }
 0x297   :  { %1426 = vrot.lane.b32.xlu0 %v1862_v6, %s1974_s24 }
 0x301   :  { %v1425_v7 = vpop.permute.xlu0 %1424 }
 0x302   :  { %1672 = vmatmul.msk.f32.vlgmr.msra.gmra.mxu0 %vm1428_vm5, %v1425_v7 }
 0x309   :  { %v1427_v8 = vpop.permute.xlu0 %1426 }
 0x30a   :  { %1673 = vmatmul.msk.f32.vlgmr.msra.gmra.mxu1 %vm1428_vm5, %v1427_v8 }
 0x37f   :  { %v1454_v19 = vpop.f32.mrf.mxu0 }
 0x380   :  { %v1460_v9 = vmul.f32 %v1454_v19, %v1415_v61 }
 0x382   :  { %1463 = vst.msk [vmem:[#allocation11] sm:$0xff] %vm1462_vm6, %v1460_v9 }
 0x387   :  { %v1457_v11 = vpop.f32.mrf.mxu1 }
 0x388   :  { %v1461_v0 = vmul.f32 %v1457_v11, %v1416_v62 }
 0x38a   :  { %1464 = vst.msk [vmem:[#allocation11 + $0x8] sm:$0xff] %vm1462_vm6, %v1461_v0 }
 0x38b   :  { %1477 = dma.vmem_to_hbm [thread:$0]  %s1470_s25, 256, %s1472_s27, [#allocation7], %s1969_s21, %s1969_s21, %s1970_s22  }
 0x38c   :  { %1963 = dma.done.wait [#allocation7], 256  }
 0x38d   :  { %1964 = vsyncadd [#allocation7], 4294967040 }
 0x38e   :  { %1482 = vsyncpa [#allocation6], 1 }
 0x38f   :  { %1483 = vsyncpa [#allocation9], 1 }
 0x390   :  { %1484 = vsyncpa [#allocation7], 1 }

</bundles_post_ra>
